<compile_context>
chip_gen: v5e
topology: v5e:2x2
jax: 0.10.0
libtpu: 0.0.40
codegen_flags: <defaults>
</compile_context>

<pallas_src>
import functools

import jax
import jax.numpy as jnp
from jax.experimental import pallas as pl
from jax.experimental.pallas import tpu as pltpu


# ---------------------------------------------------------------------------
# Fused whole-stack Pallas kernel.  Per layer l (unrolled at trace time):
#   h   = h @ W_l + b_l                   (bf16 MXU operands, f32 accumulation)
#   ln  = (h - mean) * rsqrt(E[h^2] - mean^2 + eps)       (one-pass LN stats)
#   y   = ln * eff_scale_l[batch] + eff_shift_l[batch]    (folded LN + AdaLN)
#   h   = bf16(silu(y))                   (hidden layers only; final: y in f32)
# ---------------------------------------------------------------------------
def _mlp_stack_kernel(*refs, n_layers, eps):
    x_ref = refs[0]
    o_ref = refs[-1]
    layer_refs = refs[1:-1]

    h = x_ref[...]                                    # (ts, in_ch) bf16
    y = None
    for l in range(n_layers):
        w_ref, b_ref, es_ref, eh_ref = layer_refs[4 * l: 4 * l + 4]
        acc = jnp.dot(h, w_ref[...], preferred_element_type=jnp.float32)
        acc = acc + b_ref[...]                        # (ts, N_l) f32
        mean = jnp.mean(acc, axis=-1, keepdims=True)
        mean_sq = jnp.mean(acc * acc, axis=-1, keepdims=True)
        var = mean_sq - mean * mean                   # one-pass biased variance
        y = (acc - mean) * jax.lax.rsqrt(var + eps)
        y = y * es_ref[0] + eh_ref[0]                 # per-batch (1, N_l) broadcast
        if l < n_layers - 1:
            y = y * jax.nn.sigmoid(y)                 # SiLU (hidden layers only)
            h = y.astype(jnp.bfloat16)                # bf16 activation carry
    o_ref[...] = y.astype(o_ref.dtype)


def _pick_s_tile(s_pad):
    if s_pad <= 512:
        return s_pad
    for t in (512, 256, 128, 64, 32, 16, 8):
        if s_pad % t == 0:
            return t
    return s_pad


def fused_mlp_stack(x2d, layers, eff_scales, eff_shifts, *, batch, s_pad,
                    eps=1e-5, out_dtype=jnp.float32):
    """x2d: (batch*s_pad, in_ch) bf16. Returns (batch*s_pad, out_ch) out_dtype."""
    m, in_ch = x2d.shape
    n_layers = len(layers)
    out_ch = layers[-1]["w"].shape[1]
    ts = _pick_s_tile(s_pad)
    n_s_tiles = s_pad // ts
    grid = (batch, n_s_tiles)

    in_specs = [pl.BlockSpec((ts, in_ch), lambda b, s: (b * n_s_tiles + s, 0))]
    operands = [x2d]
    for lp, es, eh in zip(layers, eff_scales, eff_shifts):
        k_l, n_l = lp["w"].shape
        in_specs += [
            pl.BlockSpec((k_l, n_l), lambda b, s: (0, 0)),       # W (fetched once)
            pl.BlockSpec((1, n_l), lambda b, s: (0, 0)),         # bias
            pl.BlockSpec((1, 1, n_l), lambda b, s: (b, 0, 0)),   # eff_scale[batch]
            pl.BlockSpec((1, 1, n_l), lambda b, s: (b, 0, 0)),   # eff_shift[batch]
        ]
        operands += [lp["w"], lp["b"], es, eh]

    out_specs = pl.BlockSpec((ts, out_ch), lambda b, s: (b * n_s_tiles + s, 0))

    flops = 2 * m * sum(int(l["w"].shape[0]) * int(l["w"].shape[1]) for l in layers)
    transcendentals = m * (sum(int(l["w"].shape[1]) for l in layers[:-1]) + n_layers)
    bytes_accessed = (
        int(x2d.size) * 2
        + sum(int(l["w"].size) * 2 + int(l["b"].size) * 4 for l in layers)
        + sum(int(e.size) * 4 for e in eff_scales + eff_shifts)
        + m * out_ch * jnp.dtype(out_dtype).itemsize)

    return pl.pallas_call(
        functools.partial(_mlp_stack_kernel, n_layers=n_layers, eps=eps),
        out_shape=jax.ShapeDtypeStruct((m, out_ch), out_dtype),
        grid=grid,
        in_specs=in_specs,
        out_specs=out_specs,
        compiler_params=pltpu.CompilerParams(
            dimension_semantics=("parallel", "parallel"),
            vmem_limit_bytes=48 * 1024 * 1024,
        ),
        cost_estimate=pl.CostEstimate(
            flops=int(flops), transcendentals=int(transcendentals),
            bytes_accessed=int(bytes_accessed)),
    )(*operands)


# ---------------------------------------------------------------------------
# Conditioning path (tiny, M = batch rows): plain XLA — a Pallas launch here
# pads to 8 sublanes and is dominated by launch latency.
# ---------------------------------------------------------------------------
def sinusoidal_timestep_proj(timesteps, num_channels=256, max_period=10000.0):
    """diffusers Timesteps(256, flip_sin_to_cos=True, downscale_freq_shift=0)."""
    half = num_channels // 2
    exponent = -jnp.log(max_period) * jnp.arange(half, dtype=jnp.float32) / half
    freqs = jnp.exp(exponent)
    args = timesteps.astype(jnp.float32)[:, None] * freqs[None, :]
    return jnp.concatenate([jnp.cos(args), jnp.sin(args)], axis=-1)  # [cos, sin]


def _conditioning_embed(p, pooled, timesteps):
    """CombinedTimestepTextProjEmbeddings: timestep MLP + text MLP, summed."""
    t_proj = sinusoidal_timestep_proj(timesteps, 256)
    te = t_proj @ p["te1_w"] + p["te1_b"]
    te = te * jax.nn.sigmoid(te)
    te = te @ p["te2_w"] + p["te2_b"]
    tx = pooled @ p["tx1_w"] + p["tx1_b"]
    tx = tx * jax.nn.sigmoid(tx)
    tx = tx @ p["tx2_w"] + p["tx2_b"]
    return te + tx


# ---------------------------------------------------------------------------
# Parameters
# ---------------------------------------------------------------------------
def _linear_params(key, din, dout, w_scale=0.02):
    kw, kb = jax.random.split(key)
    w = w_scale * jax.random.normal(kw, (din, dout), jnp.float32)
    b = 0.01 * jax.random.normal(kb, (1, dout), jnp.float32)
    return w, b


def init_mlp_params(key, in_channels, out_channels, layer_dims, cond_dim):
    n_layers = len(layer_dims) + 1
    keys = jax.random.split(key, 4 + 2 * n_layers)
    ki = iter(keys)
    p = {}

    # CombinedTimestepTextProjEmbeddings (f32, XLA path)
    p["te1_w"], p["te1_b"] = _linear_params(next(ki), 256, cond_dim)
    p["te2_w"], p["te2_b"] = _linear_params(next(ki), cond_dim, cond_dim)
    p["tx1_w"], p["tx1_b"] = _linear_params(next(ki), cond_dim, cond_dim)
    p["tx2_w"], p["tx2_b"] = _linear_params(next(ki), cond_dim, cond_dim)

    ins = [in_channels] + list(layer_dims)
    outs = list(layer_dims) + [out_channels]

    all_layers, ada_ws, ada_bs = [], [], []
    for din, dout in zip(ins, outs):
        lp = {}
        w, b = _linear_params(next(ki), din, dout)
        lp["w"] = w.astype(jnp.bfloat16)     # bf16 MXU operand, halved weight DMA
        lp["b"] = b
        lp["gamma"] = jnp.ones((1, dout), jnp.float32)    # LayerNorm affine
        lp["beta"] = jnp.zeros((1, dout), jnp.float32)
        aw, ab = _linear_params(next(ki), cond_dim, 2 * dout)   # AdaLN projection
        ada_ws.append(aw)
        ada_bs.append(ab)
        all_layers.append(lp)

    # One concatenated AdaLN projection: every layer's scale/shift in 1 matmul.
    p["ada_w_all"] = jnp.concatenate(ada_ws, axis=1)
    p["ada_b_all"] = jnp.concatenate(ada_bs, axis=1)
    p["layers"] = all_layers[:-1]
    p["final"] = all_layers[-1]
    return p


# ---------------------------------------------------------------------------
# Forward
# ---------------------------------------------------------------------------
def mlp_forward(params, x, conditioning, timesteps):
    squeeze_ = (x.ndim == 2)
    if squeeze_:
        x = x[:, None, :]
    b, s, in_ch = x.shape

    # Pre-pass (hoisted XLA glue): embedder, SiLU(cond) once, one concatenated
    # AdaLN matmul for ALL layers, and gamma/beta folding into per-batch
    # eff_scale / eff_shift (kept at (B, 1, dim) — broadcast inside kernel).
    cond = _conditioning_embed(params, conditioning, timesteps)       # (B, cond_dim)
    cond_act = cond * jax.nn.sigmoid(cond)
    emb_all = cond_act @ params["ada_w_all"] + params["ada_b_all"]    # (B, sum 2*dim)

    layer_list = params["layers"] + [params["final"]]
    eff_scales, eff_shifts = [], []
    off = 0
    for lp in layer_list:
        dim = lp["w"].shape[1]
        e = emb_all[:, off:off + 2 * dim]
        off += 2 * dim
        scale, shift = e[:, :dim], e[:, dim:]                 # diffusers chunk order
        eff_scales.append((lp["gamma"] * (1.0 + scale)).reshape(b, 1, dim))
        eff_shifts.append((lp["beta"] * (1.0 + scale) + shift).reshape(b, 1, dim))

    # Pad seq rows to a sublane multiple, flatten, cast activations to bf16 ONCE.
    s_pad = ((s + 7) // 8) * 8
    if s_pad != s:
        x = jnp.pad(x, ((0, 0), (0, s_pad - s), (0, 0)))
    x2d = x.reshape(b * s_pad, in_ch).astype(jnp.bfloat16)

    out2d = fused_mlp_stack(x2d, layer_list, eff_scales, eff_shifts,
                            batch=b, s_pad=s_pad)
    # TODO(synk): nn.Dropout(0.1) after each hidden layer is identity (eval mode).

    out = out2d.reshape(b, s_pad, -1)[:, :s, :]
    if squeeze_:
        out = out[:, 0, :]
    return out


# ---------------------------------------------------------------------------
# Pure-f32 JAX reference (numerics check for the bf16 kernel path)
# ---------------------------------------------------------------------------
def mlp_reference(params, x, conditioning, timesteps, eps=1e-5):
    squeeze_ = (x.ndim == 2)
    if squeeze_:
        x = x[:, None, :]
    cond = _conditioning_embed(params, conditioning, timesteps)
    cond_act = cond * jax.nn.sigmoid(cond)
    emb_all = cond_act @ params["ada_w_all"] + params["ada_b_all"]

    layer_list = params["layers"] + [params["final"]]
    h = x.astype(jnp.float32)
    off = 0
    for li, lp in enumerate(layer_list):
        dim = lp["w"].shape[1]
        e = emb_all[:, off:off + 2 * dim]
        off += 2 * dim
        scale, shift = e[:, :dim], e[:, dim:]
        h = h @ lp["w"].astype(jnp.float32) + lp["b"]
        mean = jnp.mean(h, axis=-1, keepdims=True)
        var = jnp.mean(jnp.square(h - mean), axis=-1, keepdims=True)
        ln = (h - mean) * jax.lax.rsqrt(var + eps)
        ln = ln * lp["gamma"] + lp["beta"]
        h = ln * (1.0 + scale)[:, None, :] + shift[:, None, :]
        if li < len(layer_list) - 1:
            h = h * jax.nn.sigmoid(h)
    if squeeze_:
        h = h[:, 0, :]
    return h


# ---------------------------------------------------------------------------
# Demo
# ---------------------------------------------------------------------------
if __name__ == "__main__":
    # Small, TPU-friendly config (defaults scaled down: 512->128, 2048->256).
    B, S = 2, 8
    IN_CH, OUT_CH = 128, 128
    LAYER_DIMS = [256, 256, 256]
    COND_DIM = 128

    root = jax.random.PRNGKey(0)
    k_p, k_x, k_c = jax.random.split(root, 3)

    params = init_mlp_params(k_p, IN_CH, OUT_CH, LAYER_DIMS, COND_DIM)
    x = jax.random.normal(k_x, (B, S, IN_CH), jnp.float32)
    conditioning = jax.random.normal(k_c, (B, COND_DIM), jnp.float32)
    timesteps = jnp.array([0.0, 500.0], jnp.float32)

    fwd = jax.jit(mlp_forward)
    out = jax.block_until_ready(fwd(params, x, conditioning, timesteps))
    assert out.shape == (B, S, OUT_CH), out.shape
    assert bool(jnp.all(jnp.isfinite(out)))

    # Loose tolerance check vs pure-f32 reference (bf16 activations/weights).
    ref = mlp_reference(params, x, conditioning, timesteps)
    max_err = float(jnp.max(jnp.abs(out - ref)))
    assert max_err < 0.25, f"max abs err vs f32 reference: {max_err}"

    print("KERNEL_OK")
</pallas_src>

<mosaic_0001>
module attributes {stable_mosaic.version = 11 : i64} {
  func.func @_mlp_stack_kernel(%arg0: i32, %arg1: i32, %arg2: memref<8x128xbf16, #tpu.memory_space<vmem>>, %arg3: memref<128x256xbf16, #tpu.memory_space<vmem>>, %arg4: memref<1x256xf32, #tpu.memory_space<vmem>>, %arg5: memref<1x1x256xf32, #tpu.memory_space<vmem>>, %arg6: memref<1x1x256xf32, #tpu.memory_space<vmem>>, %arg7: memref<256x256xbf16, #tpu.memory_space<vmem>>, %arg8: memref<1x256xf32, #tpu.memory_space<vmem>>, %arg9: memref<1x1x256xf32, #tpu.memory_space<vmem>>, %arg10: memref<1x1x256xf32, #tpu.memory_space<vmem>>, %arg11: memref<256x256xbf16, #tpu.memory_space<vmem>>, %arg12: memref<1x256xf32, #tpu.memory_space<vmem>>, %arg13: memref<1x1x256xf32, #tpu.memory_space<vmem>>, %arg14: memref<1x1x256xf32, #tpu.memory_space<vmem>>, %arg15: memref<256x128xbf16, #tpu.memory_space<vmem>>, %arg16: memref<1x128xf32, #tpu.memory_space<vmem>>, %arg17: memref<1x1x128xf32, #tpu.memory_space<vmem>>, %arg18: memref<1x1x128xf32, #tpu.memory_space<vmem>>, %arg19: memref<8x128xf32, #tpu.memory_space<vmem>>) attributes {dimension_semantics = [#tpu.dimension_semantics<parallel>, #tpu.dimension_semantics<parallel>], iteration_bounds = array<i64: 2, 1>, scalar_prefetch = 0 : i64, scratch_operands = 0 : i64, tpu.core_type = #tpu.core_type<tc>, window_params = [{transform_indices = @transform_0, window_bounds = array<i64: 8, 128>}, {pipeline_mode = #tpu.pipeline_mode<synchronous>, transform_indices = @transform_1, window_bounds = array<i64: 128, 256>}, {pipeline_mode = #tpu.pipeline_mode<synchronous>, transform_indices = @transform_2, window_bounds = array<i64: 1, 256>}, {transform_indices = @transform_3, window_bounds = array<i64: 1, 1, 256>}, {transform_indices = @transform_4, window_bounds = array<i64: 1, 1, 256>}, {pipeline_mode = #tpu.pipeline_mode<synchronous>, transform_indices = @transform_5, window_bounds = array<i64: 256, 256>}, {pipeline_mode = #tpu.pipeline_mode<synchronous>, transform_indices = @transform_6, window_bounds = array<i64: 1, 256>}, {transform_indices = @transform_7, window_bounds = array<i64: 1, 1, 256>}, {transform_indices = @transform_8, window_bounds = array<i64: 1, 1, 256>}, {pipeline_mode = #tpu.pipeline_mode<synchronous>, transform_indices = @transform_9, window_bounds = array<i64: 256, 256>}, {pipeline_mode = #tpu.pipeline_mode<synchronous>, transform_indices = @transform_10, window_bounds = array<i64: 1, 256>}, {transform_indices = @transform_11, window_bounds = array<i64: 1, 1, 256>}, {transform_indices = @transform_12, window_bounds = array<i64: 1, 1, 256>}, {pipeline_mode = #tpu.pipeline_mode<synchronous>, transform_indices = @transform_13, window_bounds = array<i64: 256, 128>}, {pipeline_mode = #tpu.pipeline_mode<synchronous>, transform_indices = @transform_14, window_bounds = array<i64: 1, 128>}, {transform_indices = @transform_15, window_bounds = array<i64: 1, 1, 128>}, {transform_indices = @transform_16, window_bounds = array<i64: 1, 1, 128>}, {transform_indices = @transform_17, window_bounds = array<i64: 8, 128>}]} {
    %c0 = arith.constant 0 : index
    %c0_0 = arith.constant 0 : index
    %0 = vector.load %arg2[%c0, %c0_0] : memref<8x128xbf16, #tpu.memory_space<vmem>>, vector<8x128xbf16>
    %c0_1 = arith.constant 0 : index
    %c0_2 = arith.constant 0 : index
    %1 = vector.load %arg3[%c0_1, %c0_2] : memref<128x256xbf16, #tpu.memory_space<vmem>>, vector<128x256xbf16>
    %cst = arith.constant dense<0.000000e+00> : vector<8x256xf32>
    %2 = tpu.matmul %0, %1, %cst {dimension_numbers = #tpu.dot_dimension_numbers<[1], [0], [0], [1], [0, 0, 1, 1], [], []>} : vector<8x128xbf16>, vector<128x256xbf16>, vector<8x256xf32> -> vector<8x256xf32>
    %c0_3 = arith.constant 0 : index
    %c0_4 = arith.constant 0 : index
    %3 = vector.load %arg4[%c0_3, %c0_4] : memref<1x256xf32, #tpu.memory_space<vmem>>, vector<1x256xf32>
    %4 = vector.broadcast %3 : vector<1x256xf32> to vector<8x256xf32>
    %5 = arith.addf %2, %4 : vector<8x256xf32>
    %cst_5 = arith.constant dense<0.000000e+00> : vector<8xf32>
    %6 = vector.multi_reduction <add>, %5, %cst_5 [1] : vector<8x256xf32> to vector<8xf32>
    %7 = vector.shape_cast %6 : vector<8xf32> to vector<8x1xf32>
    %cst_6 = arith.constant 2.560000e+02 : f32
    %8 = vector.broadcast %cst_6 : f32 to vector<8x1xf32>
    %9 = arith.divf %7, %8 : vector<8x1xf32>
    %10 = arith.mulf %5, %5 : vector<8x256xf32>
    %cst_7 = arith.constant dense<0.000000e+00> : vector<8xf32>
    %11 = vector.multi_reduction <add>, %10, %cst_7 [1] : vector<8x256xf32> to vector<8xf32>
    %12 = vector.shape_cast %11 : vector<8xf32> to vector<8x1xf32>
    %cst_8 = arith.constant 2.560000e+02 : f32
    %13 = vector.broadcast %cst_8 : f32 to vector<8x1xf32>
    %14 = arith.divf %12, %13 : vector<8x1xf32>
    %15 = arith.mulf %9, %9 : vector<8x1xf32>
    %16 = arith.subf %14, %15 : vector<8x1xf32>
    %17 = vector.broadcast %9 : vector<8x1xf32> to vector<8x256xf32>
    %18 = arith.subf %5, %17 : vector<8x256xf32>
    %cst_9 = arith.constant 9.99999974E-6 : f32
    %19 = vector.broadcast %cst_9 : f32 to vector<8x1xf32>
    %20 = arith.addf %16, %19 : vector<8x1xf32>
    %21 = math.rsqrt %20 : vector<8x1xf32>
    %22 = vector.broadcast %21 : vector<8x1xf32> to vector<8x256xf32>
    %23 = arith.mulf %18, %22 : vector<8x256xf32>
    %c0_10 = arith.constant 0 : index
    %c0_11 = arith.constant 0 : index
    %c0_12 = arith.constant 0 : index
    %24 = vector.load %arg5[%c0_10, %c0_11, %c0_12] : memref<1x1x256xf32, #tpu.memory_space<vmem>>, vector<1x1x256xf32>
    %25 = vector.shape_cast %24 : vector<1x1x256xf32> to vector<1x256xf32>
    %26 = vector.broadcast %25 : vector<1x256xf32> to vector<8x256xf32>
    %27 = arith.mulf %23, %26 : vector<8x256xf32>
    %c0_13 = arith.constant 0 : index
    %c0_14 = arith.constant 0 : index
    %c0_15 = arith.constant 0 : index
    %28 = vector.load %arg6[%c0_13, %c0_14, %c0_15] : memref<1x1x256xf32, #tpu.memory_space<vmem>>, vector<1x1x256xf32>
    %29 = vector.shape_cast %28 : vector<1x1x256xf32> to vector<1x256xf32>
    %30 = vector.broadcast %29 : vector<1x256xf32> to vector<8x256xf32>
    %31 = arith.addf %27, %30 : vector<8x256xf32>
    %32 = arith.negf %31 : vector<8x256xf32>
    %33 = math.exp %32 : vector<8x256xf32>
    %cst_16 = arith.constant 1.000000e+00 : f32
    %34 = vector.broadcast %cst_16 : f32 to vector<8x256xf32>
    %35 = arith.addf %34, %33 : vector<8x256xf32>
    %36 = arith.divf %34, %35 : vector<8x256xf32>
    %37 = arith.mulf %31, %36 : vector<8x256xf32>
    %38 = arith.truncf %37 : vector<8x256xf32> to vector<8x256xbf16>
    %c0_17 = arith.constant 0 : index
    %c0_18 = arith.constant 0 : index
    %39 = vector.load %arg7[%c0_17, %c0_18] : memref<256x256xbf16, #tpu.memory_space<vmem>>, vector<256x256xbf16>
    %cst_19 = arith.constant dense<0.000000e+00> : vector<8x256xf32>
    %40 = tpu.matmul %38, %39, %cst_19 {dimension_numbers = #tpu.dot_dimension_numbers<[1], [0], [0], [1], [0, 0, 1, 1], [], []>} : vector<8x256xbf16>, vector<256x256xbf16>, vector<8x256xf32> -> vector<8x256xf32>
    %c0_20 = arith.constant 0 : index
    %c0_21 = arith.constant 0 : index
    %41 = vector.load %arg8[%c0_20, %c0_21] : memref<1x256xf32, #tpu.memory_space<vmem>>, vector<1x256xf32>
    %42 = vector.broadcast %41 : vector<1x256xf32> to vector<8x256xf32>
    %43 = arith.addf %40, %42 : vector<8x256xf32>
    %cst_22 = arith.constant dense<0.000000e+00> : vector<8xf32>
    %44 = vector.multi_reduction <add>, %43, %cst_22 [1] : vector<8x256xf32> to vector<8xf32>
    %45 = vector.shape_cast %44 : vector<8xf32> to vector<8x1xf32>
    %cst_23 = arith.constant 2.560000e+02 : f32
    %46 = vector.broadcast %cst_23 : f32 to vector<8x1xf32>
    %47 = arith.divf %45, %46 : vector<8x1xf32>
    %48 = arith.mulf %43, %43 : vector<8x256xf32>
    %cst_24 = arith.constant dense<0.000000e+00> : vector<8xf32>
    %49 = vector.multi_reduction <add>, %48, %cst_24 [1] : vector<8x256xf32> to vector<8xf32>
    %50 = vector.shape_cast %49 : vector<8xf32> to vector<8x1xf32>
    %cst_25 = arith.constant 2.560000e+02 : f32
    %51 = vector.broadcast %cst_25 : f32 to vector<8x1xf32>
    %52 = arith.divf %50, %51 : vector<8x1xf32>
    %53 = arith.mulf %47, %47 : vector<8x1xf32>
    %54 = arith.subf %52, %53 : vector<8x1xf32>
    %55 = vector.broadcast %47 : vector<8x1xf32> to vector<8x256xf32>
    %56 = arith.subf %43, %55 : vector<8x256xf32>
    %cst_26 = arith.constant 9.99999974E-6 : f32
    %57 = vector.broadcast %cst_26 : f32 to vector<8x1xf32>
    %58 = arith.addf %54, %57 : vector<8x1xf32>
    %59 = math.rsqrt %58 : vector<8x1xf32>
    %60 = vector.broadcast %59 : vector<8x1xf32> to vector<8x256xf32>
    %61 = arith.mulf %56, %60 : vector<8x256xf32>
    %c0_27 = arith.constant 0 : index
    %c0_28 = arith.constant 0 : index
    %c0_29 = arith.constant 0 : index
    %62 = vector.load %arg9[%c0_27, %c0_28, %c0_29] : memref<1x1x256xf32, #tpu.memory_space<vmem>>, vector<1x1x256xf32>
    %63 = vector.shape_cast %62 : vector<1x1x256xf32> to vector<1x256xf32>
    %64 = vector.broadcast %63 : vector<1x256xf32> to vector<8x256xf32>
    %65 = arith.mulf %61, %64 : vector<8x256xf32>
    %c0_30 = arith.constant 0 : index
    %c0_31 = arith.constant 0 : index
    %c0_32 = arith.constant 0 : index
    %66 = vector.load %arg10[%c0_30, %c0_31, %c0_32] : memref<1x1x256xf32, #tpu.memory_space<vmem>>, vector<1x1x256xf32>
    %67 = vector.shape_cast %66 : vector<1x1x256xf32> to vector<1x256xf32>
    %68 = vector.broadcast %67 : vector<1x256xf32> to vector<8x256xf32>
    %69 = arith.addf %65, %68 : vector<8x256xf32>
    %70 = arith.negf %69 : vector<8x256xf32>
    %71 = math.exp %70 : vector<8x256xf32>
    %cst_33 = arith.constant 1.000000e+00 : f32
    %72 = vector.broadcast %cst_33 : f32 to vector<8x256xf32>
    %73 = arith.addf %72, %71 : vector<8x256xf32>
    %74 = arith.divf %72, %73 : vector<8x256xf32>
    %75 = arith.mulf %69, %74 : vector<8x256xf32>
    %76 = arith.truncf %75 : vector<8x256xf32> to vector<8x256xbf16>
    %c0_34 = arith.constant 0 : index
    %c0_35 = arith.constant 0 : index
    %77 = vector.load %arg11[%c0_34, %c0_35] : memref<256x256xbf16, #tpu.memory_space<vmem>>, vector<256x256xbf16>
    %cst_36 = arith.constant dense<0.000000e+00> : vector<8x256xf32>
    %78 = tpu.matmul %76, %77, %cst_36 {dimension_numbers = #tpu.dot_dimension_numbers<[1], [0], [0], [1], [0, 0, 1, 1], [], []>} : vector<8x256xbf16>, vector<256x256xbf16>, vector<8x256xf32> -> vector<8x256xf32>
    %c0_37 = arith.constant 0 : index
    %c0_38 = arith.constant 0 : index
    %79 = vector.load %arg12[%c0_37, %c0_38] : memref<1x256xf32, #tpu.memory_space<vmem>>, vector<1x256xf32>
    %80 = vector.broadcast %79 : vector<1x256xf32> to vector<8x256xf32>
    %81 = arith.addf %78, %80 : vector<8x256xf32>
    %cst_39 = arith.constant dense<0.000000e+00> : vector<8xf32>
    %82 = vector.multi_reduction <add>, %81, %cst_39 [1] : vector<8x256xf32> to vector<8xf32>
    %83 = vector.shape_cast %82 : vector<8xf32> to vector<8x1xf32>
    %cst_40 = arith.constant 2.560000e+02 : f32
    %84 = vector.broadcast %cst_40 : f32 to vector<8x1xf32>
    %85 = arith.divf %83, %84 : vector<8x1xf32>
    %86 = arith.mulf %81, %81 : vector<8x256xf32>
    %cst_41 = arith.constant dense<0.000000e+00> : vector<8xf32>
    %87 = vector.multi_reduction <add>, %86, %cst_41 [1] : vector<8x256xf32> to vector<8xf32>
    %88 = vector.shape_cast %87 : vector<8xf32> to vector<8x1xf32>
    %cst_42 = arith.constant 2.560000e+02 : f32
    %89 = vector.broadcast %cst_42 : f32 to vector<8x1xf32>
    %90 = arith.divf %88, %89 : vector<8x1xf32>
    %91 = arith.mulf %85, %85 : vector<8x1xf32>
    %92 = arith.subf %90, %91 : vector<8x1xf32>
    %93 = vector.broadcast %85 : vector<8x1xf32> to vector<8x256xf32>
    %94 = arith.subf %81, %93 : vector<8x256xf32>
    %cst_43 = arith.constant 9.99999974E-6 : f32
    %95 = vector.broadcast %cst_43 : f32 to vector<8x1xf32>
    %96 = arith.addf %92, %95 : vector<8x1xf32>
    %97 = math.rsqrt %96 : vector<8x1xf32>
    %98 = vector.broadcast %97 : vector<8x1xf32> to vector<8x256xf32>
    %99 = arith.mulf %94, %98 : vector<8x256xf32>
    %c0_44 = arith.constant 0 : index
    %c0_45 = arith.constant 0 : index
    %c0_46 = arith.constant 0 : index
    %100 = vector.load %arg13[%c0_44, %c0_45, %c0_46] : memref<1x1x256xf32, #tpu.memory_space<vmem>>, vector<1x1x256xf32>
    %101 = vector.shape_cast %100 : vector<1x1x256xf32> to vector<1x256xf32>
    %102 = vector.broadcast %101 : vector<1x256xf32> to vector<8x256xf32>
    %103 = arith.mulf %99, %102 : vector<8x256xf32>
    %c0_47 = arith.constant 0 : index
    %c0_48 = arith.constant 0 : index
    %c0_49 = arith.constant 0 : index
    %104 = vector.load %arg14[%c0_47, %c0_48, %c0_49] : memref<1x1x256xf32, #tpu.memory_space<vmem>>, vector<1x1x256xf32>
    %105 = vector.shape_cast %104 : vector<1x1x256xf32> to vector<1x256xf32>
    %106 = vector.broadcast %105 : vector<1x256xf32> to vector<8x256xf32>
    %107 = arith.addf %103, %106 : vector<8x256xf32>
    %108 = arith.negf %107 : vector<8x256xf32>
    %109 = math.exp %108 : vector<8x256xf32>
    %cst_50 = arith.constant 1.000000e+00 : f32
    %110 = vector.broadcast %cst_50 : f32 to vector<8x256xf32>
    %111 = arith.addf %110, %109 : vector<8x256xf32>
    %112 = arith.divf %110, %111 : vector<8x256xf32>
    %113 = arith.mulf %107, %112 : vector<8x256xf32>
    %114 = arith.truncf %113 : vector<8x256xf32> to vector<8x256xbf16>
    %c0_51 = arith.constant 0 : index
    %c0_52 = arith.constant 0 : index
    %115 = vector.load %arg15[%c0_51, %c0_52] : memref<256x128xbf16, #tpu.memory_space<vmem>>, vector<256x128xbf16>
    %cst_53 = arith.constant dense<0.000000e+00> : vector<8x128xf32>
    %116 = tpu.matmul %114, %115, %cst_53 {dimension_numbers = #tpu.dot_dimension_numbers<[1], [0], [0], [1], [0, 0, 1, 1], [], []>} : vector<8x256xbf16>, vector<256x128xbf16>, vector<8x128xf32> -> vector<8x128xf32>
    %c0_54 = arith.constant 0 : index
    %c0_55 = arith.constant 0 : index
    %117 = vector.load %arg16[%c0_54, %c0_55] : memref<1x128xf32, #tpu.memory_space<vmem>>, vector<1x128xf32>
    %118 = vector.broadcast %117 : vector<1x128xf32> to vector<8x128xf32>
    %119 = arith.addf %116, %118 : vector<8x128xf32>
    %cst_56 = arith.constant dense<0.000000e+00> : vector<8xf32>
    %120 = vector.multi_reduction <add>, %119, %cst_56 [1] : vector<8x128xf32> to vector<8xf32>
    %121 = vector.shape_cast %120 : vector<8xf32> to vector<8x1xf32>
    %cst_57 = arith.constant 1.280000e+02 : f32
    %122 = vector.broadcast %cst_57 : f32 to vector<8x1xf32>
    %123 = arith.divf %121, %122 : vector<8x1xf32>
    %124 = arith.mulf %119, %119 : vector<8x128xf32>
    %cst_58 = arith.constant dense<0.000000e+00> : vector<8xf32>
    %125 = vector.multi_reduction <add>, %124, %cst_58 [1] : vector<8x128xf32> to vector<8xf32>
    %126 = vector.shape_cast %125 : vector<8xf32> to vector<8x1xf32>
    %cst_59 = arith.constant 1.280000e+02 : f32
    %127 = vector.broadcast %cst_59 : f32 to vector<8x1xf32>
    %128 = arith.divf %126, %127 : vector<8x1xf32>
    %129 = arith.mulf %123, %123 : vector<8x1xf32>
    %130 = arith.subf %128, %129 : vector<8x1xf32>
    %131 = vector.broadcast %123 : vector<8x1xf32> to vector<8x128xf32>
    %132 = arith.subf %119, %131 : vector<8x128xf32>
    %cst_60 = arith.constant 9.99999974E-6 : f32
    %133 = vector.broadcast %cst_60 : f32 to vector<8x1xf32>
    %134 = arith.addf %130, %133 : vector<8x1xf32>
    %135 = math.rsqrt %134 : vector<8x1xf32>
    %136 = vector.broadcast %135 : vector<8x1xf32> to vector<8x128xf32>
    %137 = arith.mulf %132, %136 : vector<8x128xf32>
    %c0_61 = arith.constant 0 : index
    %c0_62 = arith.constant 0 : index
    %c0_63 = arith.constant 0 : index
    %138 = vector.load %arg17[%c0_61, %c0_62, %c0_63] : memref<1x1x128xf32, #tpu.memory_space<vmem>>, vector<1x1x128xf32>
    %139 = vector.shape_cast %138 : vector<1x1x128xf32> to vector<1x128xf32>
    %140 = vector.broadcast %139 : vector<1x128xf32> to vector<8x128xf32>
    %141 = arith.mulf %137, %140 : vector<8x128xf32>
    %c0_64 = arith.constant 0 : index
    %c0_65 = arith.constant 0 : index
    %c0_66 = arith.constant 0 : index
    %142 = vector.load %arg18[%c0_64, %c0_65, %c0_66] : memref<1x1x128xf32, #tpu.memory_space<vmem>>, vector<1x1x128xf32>
    %143 = vector.shape_cast %142 : vector<1x1x128xf32> to vector<1x128xf32>
    %144 = vector.broadcast %143 : vector<1x128xf32> to vector<8x128xf32>
    %145 = arith.addf %141, %144 : vector<8x128xf32>
    %c0_67 = arith.constant 0 : index
    %c0_68 = arith.constant 0 : index
    %146 = vector.load %arg19[%c0_67, %c0_68] : memref<8x128xf32, #tpu.memory_space<vmem>>, vector<8x128xf32>
    tpu.vector_store %arg19[%c0_67, %c0_68], %145 {strides = array<i32>} : memref<8x128xf32, #tpu.memory_space<vmem>>, vector<8x128xf32>,
    return
  }
  func.func @transform_0(%arg0: i32, %arg1: i32) -> (i32, i32) {
    %c1_i32 = arith.constant 1 : i32
    %0 = arith.muli %arg0, %c1_i32 : i32
    %1 = arith.addi %0, %arg1 : i32
    %c0_i32 = arith.constant 0 : i32
    %c0_i32_0 = arith.constant 0 : i32
    return %1, %c0_i32 : i32, i32
  }
  func.func @transform_1(%arg0: i32, %arg1: i32) -> (i32, i32) {
    %c0_i32 = arith.constant 0 : i32
    %c0_i32_0 = arith.constant 0 : i32
    %c0_i32_1 = arith.constant 0 : i32
    return %c0_i32, %c0_i32_0 : i32, i32
  }
  func.func @transform_2(%arg0: i32, %arg1: i32) -> (i32, i32) {
    %c0_i32 = arith.constant 0 : i32
    %c0_i32_0 = arith.constant 0 : i32
    %c0_i32_1 = arith.constant 0 : i32
    return %c0_i32, %c0_i32_0 : i32, i32
  }
  func.func @transform_3(%arg0: i32, %arg1: i32) -> (i32, i32, i32) {
    %c0_i32 = arith.constant 0 : i32
    %c0_i32_0 = arith.constant 0 : i32
    %c0_i32_1 = arith.constant 0 : i32
    return %arg0, %c0_i32, %c0_i32_0 : i32, i32, i32
  }
  func.func @transform_4(%arg0: i32, %arg1: i32) -> (i32, i32, i32) {
    %c0_i32 = arith.constant 0 : i32
    %c0_i32_0 = arith.constant 0 : i32
    %c0_i32_1 = arith.constant 0 : i32
    return %arg0, %c0_i32, %c0_i32_0 : i32, i32, i32
  }
  func.func @transform_5(%arg0: i32, %arg1: i32) -> (i32, i32) {
    %c0_i32 = arith.constant 0 : i32
    %c0_i32_0 = arith.constant 0 : i32
    %c0_i32_1 = arith.constant 0 : i32
    return %c0_i32, %c0_i32_0 : i32, i32
  }
  func.func @transform_6(%arg0: i32, %arg1: i32) -> (i32, i32) {
    %c0_i32 = arith.constant 0 : i32
    %c0_i32_0 = arith.constant 0 : i32
    %c0_i32_1 = arith.constant 0 : i32
    return %c0_i32, %c0_i32_0 : i32, i32
  }
  func.func @transform_7(%arg0: i32, %arg1: i32) -> (i32, i32, i32) {
    %c0_i32 = arith.constant 0 : i32
    %c0_i32_0 = arith.constant 0 : i32
    %c0_i32_1 = arith.constant 0 : i32
    return %arg0, %c0_i32, %c0_i32_0 : i32, i32, i32
  }
  func.func @transform_8(%arg0: i32, %arg1: i32) -> (i32, i32, i32) {
    %c0_i32 = arith.constant 0 : i32
    %c0_i32_0 = arith.constant 0 : i32
    %c0_i32_1 = arith.constant 0 : i32
    return %arg0, %c0_i32, %c0_i32_0 : i32, i32, i32
  }
  func.func @transform_9(%arg0: i32, %arg1: i32) -> (i32, i32) {
    %c0_i32 = arith.constant 0 : i32
    %c0_i32_0 = arith.constant 0 : i32
    %c0_i32_1 = arith.constant 0 : i32
    return %c0_i32, %c0_i32_0 : i32, i32
  }
  func.func @transform_10(%arg0: i32, %arg1: i32) -> (i32, i32) {
    %c0_i32 = arith.constant 0 : i32
    %c0_i32_0 = arith.constant 0 : i32
    %c0_i32_1 = arith.constant 0 : i32
    return %c0_i32, %c0_i32_0 : i32, i32
  }
  func.func @transform_11(%arg0: i32, %arg1: i32) -> (i32, i32, i32) {
    %c0_i32 = arith.constant 0 : i32
    %c0_i32_0 = arith.constant 0 : i32
    %c0_i32_1 = arith.constant 0 : i32
    return %arg0, %c0_i32, %c0_i32_0 : i32, i32, i32
  }
  func.func @transform_12(%arg0: i32, %arg1: i32) -> (i32, i32, i32) {
    %c0_i32 = arith.constant 0 : i32
    %c0_i32_0 = arith.constant 0 : i32
    %c0_i32_1 = arith.constant 0 : i32
    return %arg0, %c0_i32, %c0_i32_0 : i32, i32, i32
  }
  func.func @transform_13(%arg0: i32, %arg1: i32) -> (i32, i32) {
    %c0_i32 = arith.constant 0 : i32
    %c0_i32_0 = arith.constant 0 : i32
    %c0_i32_1 = arith.constant 0 : i32
    return %c0_i32, %c0_i32_0 : i32, i32
  }
  func.func @transform_14(%arg0: i32, %arg1: i32) -> (i32, i32) {
    %c0_i32 = arith.constant 0 : i32
    %c0_i32_0 = arith.constant 0 : i32
    %c0_i32_1 = arith.constant 0 : i32
    return %c0_i32, %c0_i32_0 : i32, i32
  }
  func.func @transform_15(%arg0: i32, %arg1: i32) -> (i32, i32, i32) {
    %c0_i32 = arith.constant 0 : i32
    %c0_i32_0 = arith.constant 0 : i32
    %c0_i32_1 = arith.constant 0 : i32
    return %arg0, %c0_i32, %c0_i32_0 : i32, i32, i32
  }
  func.func @transform_16(%arg0: i32, %arg1: i32) -> (i32, i32, i32) {
    %c0_i32 = arith.constant 0 : i32
    %c0_i32_0 = arith.constant 0 : i32
    %c0_i32_1 = arith.constant 0 : i32
    return %arg0, %c0_i32, %c0_i32_0 : i32, i32, i32
  }
  func.func @transform_17(%arg0: i32, %arg1: i32) -> (i32, i32) {
    %c1_i32 = arith.constant 1 : i32
    %0 = arith.muli %arg0, %c1_i32 : i32
    %1 = arith.addi %0, %arg1 : i32
    %c0_i32 = arith.constant 0 : i32
    %c0_i32_0 = arith.constant 0 : i32
    return %1, %c0_i32 : i32, i32
  }
}

</mosaic_0001>

<bundles_post_ra>
// kernel: mlp_forward.1
= control target key start
LH: loop header
LB: loop body
LE: loop exit
PB: predicated region body
PF: predicated region fallthrough
CT: control target
= control target key end

     0   :  { %s3483_s0 = inlined_call_operand.vmem [shape: bf16[16,128], index: 0, kind: input, shape index: {}]   ;;  %s3484_s1 = inlined_call_operand.vmem [shape: bf16[128,256], index: 1, kind: input, shape index: {}]   ;;  %s3485_s2 = inlined_call_operand.vmem [shape: f32[1,256], index: 2, kind: input, shape index: {}]   ;;  %s3486_s3 = inlined_call_operand.vmem [shape: f32[2,1,256], index: 3, kind: input, shape index: {}]   ;;  %s3487_s4 = inlined_call_operand.vmem [shape: f32[2,1,256], index: 4, kind: input, shape index: {}]   ;;  %s3488_s5 = inlined_call_operand.vmem [shape: bf16[256,256], index: 5, kind: input, shape index: {}]   ;;  %s3489_s6 = inlined_call_operand.vmem [shape: f32[1,256], index: 6, kind: input, shape index: {}]   ;;  %s3490_s7 = inlined_call_operand.vmem [shape: f32[2,1,256], index: 7, kind: input, shape index: {}]   ;;  %s3491_s8 = inlined_call_operand.vmem [shape: f32[2,1,256], index: 8, kind: input, shape index: {}]   ;;  %s3492_s9 = inlined_call_operand.vmem [shape: bf16[256,256], index: 9, kind: input, shape index: {}]   ;;  %s3493_s10 = inlined_call_operand.vmem [shape: f32[1,256], index: 10, kind: input, shape index: {}]   ;;  %s3494_s11 = inlined_call_operand.vmem [shape: f32[2,1,256], index: 11, kind: input, shape index: {}]   ;;  %s3495_s12 = inlined_call_operand.vmem [shape: f32[2,1,256], index: 12, kind: input, shape index: {}]   ;;  %s3496_s13 = inlined_call_operand.vmem [shape: bf16[256,128], index: 13, kind: input, shape index: {}]   ;;  %s3497_s14 = inlined_call_operand.vmem [shape: f32[1,128], index: 14, kind: input, shape index: {}]   ;;  %s3498_s15 = inlined_call_operand.vmem [shape: f32[2,1,128], index: 15, kind: input, shape index: {}]   ;;  %s3499_s16 = inlined_call_operand.vmem [shape: f32[2,1,128], index: 16, kind: input, shape index: {}]   ;;  %s3500_s17 = inlined_call_operand.hbm [shape: f32[16,128], index: 17, kind: output, shape index: {}]  }
   0x1   :  { %3509 = sst [smem:[#allocation11_spill]] %s3483_s0 }
   0x2   :  { %3510 = sst [smem:[#allocation12_spill]] %s3484_s1 }
   0x3   :  { %3511 = sst [smem:[#allocation13_spill]] %s3485_s2 }
   0x4   :  { %3512 = sst [smem:[#allocation14_spill]] %s3486_s3 }
   0x5   :  { %3513 = sst [smem:[#allocation15_spill]] %s3487_s4 }
   0x6   :  { %3514 = sst [smem:[#allocation16_spill]] %s3488_s5 }
   0x7   :  { %3515 = sst [smem:[#allocation17_spill]] %s3489_s6 }
   0x8   :  { %3516 = sst [smem:[#allocation18_spill]] %s3499_s16 }
   0x9   :  { %3517 = sst [smem:[#allocation19_spill]] %s3500_s17 }
   0xa   :  { %22 = vsyncpa [#allocation3], 0 }
   0xb   :  { %24 = vsyncpa [#allocation3 + $0x1], 0  ;;  %s2731_s24 = smov 0   ;;  %s2733_s25 = smov 0  }
   0xc   :  { %s2735_s26 = smov 0   ;;  %s2737_s27 = smov 0  }
   0xd   :  { %s2739_s28 = smov 0   ;;  %s2741_s29 = smov 0  }
   0xe LB: > { %3518 = sst [smem:[#allocation5_spill]] %s2617_s24  ;;  %s1960_s0 = sadd.s32 4294967295, %s2637_s29   ;;  %s2637_s29 = sphi %s2741_s29, %s30_s29   ;;  %s2633_s28 = sphi %s2739_s28, %s3544_s28   ;;  %s2629_s27 = sphi %s2737_s27, %s3543_s27   ;;  %s2625_s26 = sphi %s2735_s26, %s3542_s26   ;;  %s2621_s25 = sphi %s2733_s25, %s3541_s25   ;;  %s2617_s24 = sphi %s2731_s24, %s3540_s24  }
   0xf   : > { %3519 = sst [smem:[#allocation6_spill]] %s2621_s25  ;;  %s1961_s30 = sadd.s32 4294967294, %s2637_s29  }
  0x10   : > { %3520 = sst [smem:[#allocation7_spill]] %s2625_s26  ;;  %s42_s18 = sadd.s32 1, %s2633_s28 }
  0x11   : > { %3521 = sst [smem:[#allocation8_spill]] %s2633_s28  ;;  %s455_s19 = sadd.s32 1, %s2625_s26 }
  0x12   : > { %p44_p0 = scmp.ge.s32.totalorder %s42_s18, 2  ;;  %p465_p1 = scmp.ne.s32.totalorder %s2625_s26, %s2621_s25 }
  0x13   : > { %p466_p2 = scmp.eq.s32.totalorder %s1960_s0, 1  ;;  %p471_p3 = scmp.ne.s32.totalorder %s2621_s25, %s2617_s24 }
  0x14   : > { %s3546_s18 = smov (%p44_p0, %s42_s18), 0  ;;  %p472_p5 = scmp.eq.s32.totalorder %s1961_s30, 1 }
  0x15   : > { %3522 = sst [smem:[#allocation9_spill]] %s3546_s18  ;;  %p2771_p4 = por %p466_p2, %p465_p1 }
  0x16   : > { %s452_s20 = ssub.s32 %s2633_s28, %s3546_s18  ;;  %p1964_p6 = scmp.ge.s32.totalorder %s2637_s29, 1 }
  0x17   : > { %p453_p7 = scmp.eq.s32.totalorder %s452_s20, 0  ;;  %p2778_p8 = por %p472_p5, %p471_p3 }
  0x18   : > { %p577_p9 = scmp.lt.s32.totalorder %s2637_s29, 3 }
  0x19   : > { %s2784_s22 = scalar_select %p453_p7, %s2625_s26, %s455_s19  }
  0x1a   : > { %p578_p10 = pnand %p1964_p6, %p577_p9 }
  0x1b   : > { %3525 = sst [smem:[#allocation10_spill]] %s2784_s22  ;;  %p660_p11 = scmp.lt.s32.totalorder (!%p578_p10), %s2629_s27, 1 }
  0x1c   : > { %581 = sbr.rel (%p578_p10) target bundleno = 1320 (0x528), region = 88  ;;  %s3526_s24 = sld [smem:[#allocation12_spill]] (!%p578_p10) }
  0x1d   : > { %s3528_s20 = sld [smem:[#allocation11_spill]] (!%p578_p10) }
  0x1e   : > { %s3529_s2 = sld [smem:[#allocation13_spill]] (!%p578_p10) }
  0x1f   : > { %s3530_s5 = sld [smem:[#allocation16_spill]] (!%p578_p10) }
  0x20   : > { %s3531_s3 = sld [smem:[#allocation14_spill]] (!%p578_p10) }
  0x21   : > { %s2872_s30 = scalar_select %p660_p11, %s2629_s27, 1  ;;  %v2639_v62 = vmov 256.0  }
  0x22   : > { %s3527_s17 = smov %s3526_s24  ;;  %v2031_v0 = vld [vmem:[%s3526_s24 + $0x70] sm:$0xf]  ;;  %2523 = vrcp.f32 %v2639_v62  ;;  %s3532_s4 = sld [smem:[#allocation15_spill]] }
  0x23   : > { %v2382_v1 = vld [vmem:[%s3527_s17 + $0x74] sm:$0xf0]  ;;  %v2381_v2 = vld [vmem:[%s3527_s17 + $0x74] sm:$0xf]  ;;  %v2033_v4 = vld [vmem:[%s3527_s17 + $0x78] sm:$0xf0] }
  0x24   : > { %v2032_v3 = vor.u32 %v2382_v1, %v2031_v0  ;;  %v2023_v5 = vld [vmem:[%s3527_s17 + $0x60] sm:$0xf]  ;;  %v2380_v6 = vld [vmem:[%s3527_s17 + $0x64] sm:$0xf0]  ;;  %v2036_v7 = vor.u32 %v2381_v2, %v2033_v4  ;;  %v2379_v8 = vld [vmem:[%s3527_s17 + $0x64] sm:$0xf] }
  0x25   : > { %v2025_v9 = vld [vmem:[%s3527_s17 + $0x68] sm:$0xf0]  ;;  %v2024_v10 = vor.u32 %v2380_v6, %v2023_v5  ;;  %v2015_v12 = vld [vmem:[%s3527_s17 + $0x50] sm:$0xf]  ;;  %v2378_v13 = vld [vmem:[%s3527_s17 + $0x54] sm:$0xf0] }
  0x26   : > { %799 = vmatpush.bf16.msra.mxu0 %v2032_v3  ;;  %812 = vmatpush.bf16.msra.mxu1 %v2036_v7  ;;  %v2028_v11 = vor.u32 %v2379_v8, %v2025_v9  ;;  %v2377_v14 = vld [vmem:[%s3527_s17 + $0x54] sm:$0xf]  ;;  %v2017_v15 = vld [vmem:[%s3527_s17 + $0x58] sm:$0xf0]  ;;  %v2016_v16 = vor.u32 %v2378_v13, %v2015_v12  ;;  %v2007_v18 = vld [vmem:[%s3527_s17 + $0x40] sm:$0xf] }
  0x27   : > { %v2020_v17 = vor.u32 %v2377_v14, %v2017_v15  ;;  %v2376_v19 = vld [vmem:[%s3527_s17 + $0x44] sm:$0xf0]  ;;  %v2375_v20 = vld [vmem:[%s3527_s17 + $0x44] sm:$0xf]  ;;  %v2009_v21 = vld [vmem:[%s3527_s17 + $0x48] sm:$0xf0] }
  0x28   : > { %v2008_v22 = vor.u32 %v2376_v19, %v2007_v18  ;;  %v2012_v23 = vor.u32 %v2375_v20, %v2009_v21  ;;  %v1999_v24 = vld [vmem:[%s3527_s17 + $0x30] sm:$0xf]  ;;  %v2374_v25 = vld [vmem:[%s3527_s17 + $0x34] sm:$0xf0]  ;;  %v2373_v26 = vld [vmem:[%s3527_s17 + $0x34] sm:$0xf]  ;;  %v2524_v63 = vpop.eup %2523 }
  0x29   : > { %v2001_v27 = vld [vmem:[%s3527_s17 + $0x38] sm:$0xf0]  ;;  %v2000_v28 = vor.u32 %v2374_v25, %v1999_v24  ;;  %v1991_v30 = vld [vmem:[%s3527_s17 + $0x20] sm:$0xf]  ;;  %v2372_v31 = vld [vmem:[%s3527_s17 + $0x24] sm:$0xf0]  ;;  %vm833_vm0 = vweird.f32 %v2524_v63 }
  0x2a   : > { %800 = vmatpush.bf16.msra.mxu0 %v2024_v10  ;;  %813 = vmatpush.bf16.msra.mxu1 %v2028_v11  ;;  %v2004_v29 = vor.u32 %v2373_v26, %v2001_v27  ;;  %v2371_v32 = vld [vmem:[%s3527_s17 + $0x24] sm:$0xf]  ;;  %v1993_v33 = vld [vmem:[%s3527_s17 + $0x28] sm:$0xf0]  ;;  %v1992_v34 = vor.u32 %v2372_v31, %v1991_v30  ;;  %v1983_v36 = vld [vmem:[%s3527_s17 + $0x10] sm:$0xf] }
  0x2b   : > { %v1996_v35 = vor.u32 %v2371_v32, %v1993_v33  ;;  %v2370_v37 = vld [vmem:[%s3527_s17 + $0x14] sm:$0xf0]  ;;  %v2369_v38 = vld [vmem:[%s3527_s17 + $0x14] sm:$0xf]  ;;  %v1985_v39 = vld [vmem:[%s3527_s17 + $0x18] sm:$0xf0] }
  0x2c   : > { %v1984_v40 = vor.u32 %v2370_v37, %v1983_v36  ;;  %v1988_v41 = vor.u32 %v2369_v38, %v1985_v39  ;;  %v1975_v42 = vld [vmem:[%s3527_s17] sm:$0xf]  ;;  %v2368_v43 = vld [vmem:[%s3527_s17 + $0x4] sm:$0xf0]  ;;  %v2367_v44 = vld [vmem:[%s3527_s17 + $0x4] sm:$0xf] }
  0x2d   : > { %v1977_v45 = vld [vmem:[%s3527_s17 + $0x8] sm:$0xf0]  ;;  %s1966_s22 = sshll.u32 %s2872_s30, 2  ;;  %v1976_v46 = vor.u32 %v2368_v43, %v1975_v42  ;;  %v713_v49 = vld [vmem:[%s3529_s2] sm:$0x3]  ;;  %v829_v0 = vmul.f32 256.0, %v2524_v63 }
  0x2e   : > { %801 = vmatpush.bf16.msra.mxu0 %v2016_v16  ;;  %814 = vmatpush.bf16.msra.mxu1 %v2020_v17  ;;  %v1980_v47 = vor.u32 %v2367_v44, %v1977_v45  ;;  %s663_s19 = scalar_lea.vmem %s3528_s20, %s1966_s22  ;;  %v715_v50 = vperm.slane %v713_v49, 0  ;;  %v716_v51 = vperm.slane %v713_v49, 1  ;;  %v2097_v4 = vld [vmem:[%s3530_s5 + $0x70] sm:$0xf]  ;;  %v2398_v5 = vld [vmem:[%s3530_s5 + $0x74] sm:$0xf0] }
  0x2f   : > { %v696_v48 = vld [vmem:[%s663_s19] sm:$0xf]  ;;  %v830_v1 = vsub.f32 1.0, %v829_v0  ;;  %v2161_v6 = vld [vmem:[%s3530_s5 + $0xf0] sm:$0xf]  ;;  %v2098_v7 = vor.u32 %v2398_v5, %v2097_v4  ;;  %s3084_s18 = sshll.u32 %s2872_s30, 1 }
  0x30   : > { %v2414_v8 = vld [vmem:[%s3530_s5 + $0xf4] sm:$0xf0]  ;;  %v2397_v9 = vld [vmem:[%s3530_s5 + $0x74] sm:$0xf]  ;;  %v2099_v10 = vld [vmem:[%s3530_s5 + $0x78] sm:$0xf0]  ;;  %s668_s24 = scalar_lea.vmem %s3531_s3, %s3084_s18  ;;  %s672_s22 = scalar_lea.vmem %s3532_s4, %s3084_s18 }
  0x31   : > { %v831_v2 = vmul.f32 %v2524_v63, %v830_v1  ;;  %v2162_v12 = vor.u32 %v2414_v8, %v2161_v6  ;;  %v2102_v13 = vor.u32 %v2397_v9, %v2099_v10  ;;  %v2413_v14 = vld [vmem:[%s3530_s5 + $0xf4] sm:$0xf]  ;;  %v2163_v15 = vld [vmem:[%s3530_s5 + $0xf8] sm:$0xf0]  ;;  %v2089_v16 = vld [vmem:[%s3530_s5 + $0x60] sm:$0xf]  ;;  %1115 = vmatpush.bf16.msra.mxu2 %v2098_v7  ;;  %s676_s25 = scalar_lea.vmem %s3490_s7, %s3084_s18  ;;  %s680_s20 = scalar_lea.vmem %s3491_s8, %s3084_s18 }
  0x32   : > { %802 = vmatpush.bf16.msra.mxu0 %v2008_v22  ;;  %815 = vmatpush.bf16.msra.mxu1 %v2012_v23  ;;  %v2166_v17 = vor.u32 %v2413_v14, %v2163_v15  ;;  %v2396_v18 = vld [vmem:[%s3530_s5 + $0x64] sm:$0xf0]  ;;  %v2153_v19 = vld [vmem:[%s3530_s5 + $0xe0] sm:$0xf]  ;;  %v2395_v24 = vld [vmem:[%s3530_s5 + $0x64] sm:$0xf]  ;;  %s684_s0 = scalar_lea.vmem %s3494_s11, %s3084_s18  ;;  %s688_s16 = scalar_lea.vmem %s3495_s12, %s3084_s18 }
  0x33   : > { %v832_v3 = vadd.f32 %v2524_v63, %v831_v2  ;;  %v2412_v20 = vld [vmem:[%s3530_s5 + $0xe4] sm:$0xf0]  ;;  %1128 = vmatpush.bf16.msra.mxu3 %v2162_v12  ;;  %v2090_v22 = vor.u32 %v2396_v18, %v2089_v16  ;;  %v2091_v25 = vld [vmem:[%s3530_s5 + $0x68] sm:$0xf0]  ;;  %v2411_v26 = vld [vmem:[%s3530_s5 + $0xe4] sm:$0xf] }
  0x34   : > { %v2154_v23 = vor.u32 %v2412_v20, %v2153_v19  ;;  %v2094_v27 = vor.u32 %v2395_v24, %v2091_v25  ;;  %v2394_v30 = vld [vmem:[%s3530_s5 + $0x54] sm:$0xf0]  ;;  %v2145_v32 = vld [vmem:[%s3530_s5 + $0xd0] sm:$0xf]  ;;  %v2083_v37 = vld [vmem:[%s3530_s5 + $0x58] sm:$0xf0] }
  0x35   : > { %v2940_v21 = vsel %vm833_vm0, %v2524_v63, %v832_v3  ;;  %v2410_v33 = vld [vmem:[%s3530_s5 + $0xd4] sm:$0xf0]  ;;  %1116 = vmatpush.bf16.msra.mxu2 %v2090_v22  ;;  %v2409_v38 = vld [vmem:[%s3530_s5 + $0xd4] sm:$0xf]  ;;  %v2147_v39 = vld [vmem:[%s3530_s5 + $0xd8] sm:$0xf0] }
  0x36   : > { %803 = vmatpush.bf16.msra.mxu0 %v2000_v28  ;;  %816 = vmatpush.bf16.msra.mxu1 %v2004_v29  ;;  %v2155_v28 = vld [vmem:[%s3530_s5 + $0xe8] sm:$0xf0]  ;;  %v2081_v29 = vld [vmem:[%s3530_s5 + $0x50] sm:$0xf]  ;;  %v2073_v42 = vld [vmem:[%s3530_s5 + $0x40] sm:$0xf]  ;;  %v2150_v45 = vor.u32 %v2409_v38, %v2147_v39 }
  0x37   : > { %v2158_v31 = vor.u32 %v2411_v26, %v2155_v28  ;;  %v2082_v36 = vor.u32 %v2394_v30, %v2081_v29  ;;  %1129 = vmatpush.bf16.msra.mxu3 %v2154_v23  ;;  %v2392_v43 = vld [vmem:[%s3530_s5 + $0x44] sm:$0xf0]  ;;  %v2137_v44 = vld [vmem:[%s3530_s5 + $0xc0] sm:$0xf]  ;;  %v2406_v0 = vld [vmem:[%s3530_s5 + $0xb4] sm:$0xf0] }
  0x38   : > { %v2389_v1 = vld [vmem:[%s3530_s5 + $0x34] sm:$0xf]  ;;  %v2067_v2 = vld [vmem:[%s3530_s5 + $0x38] sm:$0xf0]  ;;  %v2057_v9 = vld [vmem:[%s3530_s5 + $0x20] sm:$0xf] }
  0x39   : > { %1117 = vmatpush.bf16.msra.mxu2 %v2082_v36  ;;  %v2405_v3 = vld [vmem:[%s3530_s5 + $0xb4] sm:$0xf]  ;;  %v2131_v4 = vld [vmem:[%s3530_s5 + $0xb8] sm:$0xf0]  ;;  %v2070_v8 = vor.u32 %v2389_v1, %v2067_v2  ;;  %v2388_v10 = vld [vmem:[%s3530_s5 + $0x24] sm:$0xf0] }
  0x3a   : > { %804 = vmatpush.bf16.msra.mxu0 %v1992_v34  ;;  %817 = vmatpush.bf16.msra.mxu1 %v1996_v35  ;;  %v2393_v34 = vld [vmem:[%s3530_s5 + $0x54] sm:$0xf]  ;;  %v2134_v12 = vor.u32 %v2405_v3, %v2131_v4  ;;  %v2387_v14 = vld [vmem:[%s3530_s5 + $0x24] sm:$0xf]  ;;  %v2059_v15 = vld [vmem:[%s3530_s5 + $0x28] sm:$0xf0]  ;;  %v2058_v18 = vor.u32 %v2388_v10, %v2057_v9 }
  0x3b   : > { %v2403_v16 = vld [vmem:[%s3530_s5 + $0xa4] sm:$0xf]  ;;  %v2062_v20 = vor.u32 %v2387_v14, %v2059_v15  ;;  %v2049_v22 = vld [vmem:[%s3530_s5 + $0x10] sm:$0xf]  ;;  %v2386_v23 = vld [vmem:[%s3530_s5 + $0x14] sm:$0xf0] }
  0x3c   : > { %v2113_v24 = vld [vmem:[%s3530_s5 + $0x90] sm:$0xf]  ;;  %v2402_v26 = vld [vmem:[%s3530_s5 + $0x94] sm:$0xf0]  ;;  %v2051_v28 = vld [vmem:[%s3530_s5 + $0x18] sm:$0xf0] }
  0x3d   : > { %v2401_v29 = vld [vmem:[%s3530_s5 + $0x94] sm:$0xf]  ;;  %v2115_v30 = vld [vmem:[%s3530_s5 + $0x98] sm:$0xf0]  ;;  %v2384_v38 = vld [vmem:[%s3530_s5 + $0x4] sm:$0xf0] }
  0x3e   : > { %805 = vmatpush.bf16.msra.mxu0 %v1984_v40  ;;  %818 = vmatpush.bf16.msra.mxu1 %v1988_v41  ;;  %v2146_v40 = vor.u32 %v2410_v33, %v2145_v32  ;;  %v2086_v41 = vor.u32 %v2393_v34, %v2083_v37  ;;  %v2050_v32 = vor.u32 %v2386_v23, %v2049_v22  ;;  %v2041_v37 = vld [vmem:[%s3530_s5] sm:$0xf]  ;;  %s3533_s6 = sld [smem:[#allocation17_spill]]  ;;  %s2364_s18 = sshll.u32 %s2629_s27, 3 }
  0x3f   : > { %v2114_v34 = vor.u32 %v2402_v26, %v2113_v24  ;;  %v2105_v39 = vld [vmem:[%s3530_s5 + $0x80] sm:$0xf]  ;;  %s3534_s26 = sld [smem:[#allocation18_spill]] }
  0x40   : > { %1130 = vmatpush.bf16.msra.mxu3 %v2146_v40  ;;  %v2118_v40 = vor.u32 %v2401_v29, %v2115_v30  ;;  %s3536_s19 = sld [smem:[#allocation6_spill]] }
  0x41   : > { %s3537_s2 = sld [smem:[#allocation19_spill]] }
  0x42   : > { %806 = vmatpush.bf16.msra.mxu0 %v1976_v46  ;;  %819 = vmatpush.bf16.msra.mxu1 %v1980_v47  ;;  %v2408_v46 = vld [vmem:[%s3530_s5 + $0xc4] sm:$0xf0]  ;;  %v2391_v47 = vld [vmem:[%s3530_s5 + $0x44] sm:$0xf] }
  0x45   : > { %807 = vmatmul.bf16.vlgmr.msra.gmra.mxu0 %v696_v48  ;;  %820 = vmatmul.bf16.vlgmr.msra.gmra.mxu1 %v696_v48  ;;  %v2075_v48 = vld [vmem:[%s3530_s5 + $0x48] sm:$0xf0] }
  0x46   : > { %1141 = vmatpush.bf16.msrb.mxu0 %v2102_v13  ;;  %1154 = vmatpush.bf16.msrb.mxu1 %v2166_v17  ;;  %v2404_v13 = vld [vmem:[%s3530_s5 + $0xa4] sm:$0xf0]  ;;  %v2123_v17 = vld [vmem:[%s3530_s5 + $0xa8] sm:$0xf0]  ;;  %s656_s23 = sand.u32 1, %s3536_s19  }
  0x47   : > { %v2126_v25 = vor.u32 %v2403_v16, %v2123_v17 }
  0x4a   : > { %1142 = vmatpush.bf16.msrb.mxu0 %v2094_v27  ;;  %1155 = vmatpush.bf16.msrb.mxu1 %v2158_v31  ;;  %v2385_v27 = vld [vmem:[%s3530_s5 + $0x14] sm:$0xf] }
  0x4b   : > { %v2054_v36 = vor.u32 %v2385_v27, %v2051_v28 }
  0x4e   : > { %1143 = vmatpush.bf16.msrb.mxu0 %v2086_v41  ;;  %1156 = vmatpush.bf16.msrb.mxu1 %v2150_v45  ;;  %v2400_v41 = vld [vmem:[%s3530_s5 + $0x84] sm:$0xf0]  ;;  %v2399_v45 = vld [vmem:[%s3530_s5 + $0x84] sm:$0xf] }
  0xc2   : > { %v808_v52 = vpop.f32.mrf.mxu0  ;;  %v821_v54 = vpop.f32.mrf.mxu1 }
  0xc3   : > { %v2893_v53 = vadd.f32 %v808_v52, %v715_v50  ;;  %v2895_v55 = vadd.f32 %v821_v54, %v716_v51  ;;  %v2407_v50 = vld [vmem:[%s3530_s5 + $0xc4] sm:$0xf]  ;;  %v2139_v51 = vld [vmem:[%s3530_s5 + $0xc8] sm:$0xf0] }
  0xc4   : > { %v2142_v63 = vor.u32 %v2407_v50, %v2139_v51 }
  0xc5   : > { %v825_v56 = vadd.f32 %v2895_v55, %v2893_v53  ;;  %v836_v58 = vmul.f32 %v2893_v53, %v2893_v53  ;;  %v837_v59 = vmul.f32 %v2895_v55, %v2895_v55 }
  0xc6   : > { %1157 = vmatpush.bf16.msrb.mxu1 %v2142_v63 }
  0xc7   : > { %826 = vadd.xlane.f32.xlu0 %v825_v56  ;;  %v838_v61 = vadd.f32 %v837_v59, %v836_v58  ;;  %v2074_v56 = vor.u32 %v2392_v43, %v2073_v42  ;;  %v2078_v58 = vor.u32 %v2391_v47, %v2075_v48  ;;  %v2065_v59 = vld [vmem:[%s3530_s5 + $0x30] sm:$0xf]  ;;  %v2383_v42 = vld [vmem:[%s3530_s5 + $0x4] sm:$0xf]  ;;  %v2043_v43 = vld [vmem:[%s3530_s5 + $0x8] sm:$0xf0]  ;;  %v2042_v47 = vor.u32 %v2384_v38, %v2041_v37 }
  0xc8   : > { %v2046_v50 = vor.u32 %v2383_v42, %v2043_v43 }
  0xc9   : > { %1118 = vmatpush.bf16.msra.mxu2 %v2074_v56  ;;  %1144 = vmatpush.bf16.msrb.mxu0 %v2078_v58 }
  0xca   : > { %v810_v57 = vpop.f32.mrf.mxu0  ;;  %v823_v60 = vpop.f32.mrf.mxu1  ;;  %1158 = vmatpush.bf16.msrb.mxu1 %v2134_v12 }
  0xcb   : > { %v2138_v57 = vor.u32 %v2408_v46, %v2137_v44  ;;  %v2390_v60 = vld [vmem:[%s3530_s5 + $0x34] sm:$0xf0]  ;;  %v2107_v46 = vld [vmem:[%s3530_s5 + $0x88] sm:$0xf0] }
  0xcc   : > { %v2066_v6 = vor.u32 %v2390_v60, %v2065_v59  ;;  %v2110_v51 = vor.u32 %v2399_v45, %v2107_v46 }
  0xcd   : > { %1131 = vmatpush.bf16.msra.mxu3 %v2138_v57  ;;  %1145 = vmatpush.bf16.msrb.mxu0 %v2070_v8  ;;  %v867_v57 = vld [vmem:[%s672_s22] sm:$0x3]  ;;  %s691_s22 = scalar_lea.vmem %s3498_s15, %s2872_s30 }
  0xce   : > { %1119 = vmatpush.bf16.msra.mxu2 %v2066_v6  ;;  %1159 = vmatpush.bf16.msrb.mxu1 %v2126_v25  ;;  %v870_v2 = vperm.slane %v867_v57, 1 }
  0xcf   : > { %839 = vadd.xlane.f32.xlu0 %v838_v61  ;;  %v2129_v61 = vld [vmem:[%s3530_s5 + $0xb0] sm:$0xf] }
  0xd0   : > { %v2130_v7 = vor.u32 %v2406_v0, %v2129_v61  ;;  %v869_v0 = vperm.slane %v867_v57, 0 }
  0xd1   : > { %1146 = vmatpush.bf16.msrb.mxu0 %v2062_v20 }
  0xd2   : > { %1132 = vmatpush.bf16.msra.mxu3 %v2130_v7  ;;  %1120 = vmatpush.bf16.msra.mxu2 %v2058_v18 }
  0xd3   : > { %1160 = vmatpush.bf16.msrb.mxu1 %v2118_v40 }
  0xd5   : > { %1147 = vmatpush.bf16.msrb.mxu0 %v2054_v36  ;;  %v949_v36 = vld [vmem:[%s3533_s6] sm:$0x3] }
  0xd6   : > { %1121 = vmatpush.bf16.msra.mxu2 %v2050_v32  ;;  %v952_v38 = vperm.slane %v949_v36, 1  ;;  %v951_v40 = vperm.slane %v949_v36, 0  ;;  %v2440_v36 = vld [vmem:[%s3492_s9 + $0xc4] sm:$0xf0] }
  0xd7   : > { %1161 = vmatpush.bf16.msrb.mxu1 %v2110_v51 }
  0xd9   : > { %1148 = vmatpush.bf16.msrb.mxu0 %v2046_v50 }
  0xda   : > { %1122 = vmatpush.bf16.msra.mxu2 %v2042_v47 }
 0x13a   : > { %v827_v11 = vpop.xlane.xlu0 %826 }
 0x13b   : > { %v2970_v35 = vmul.f32 %v2940_v21, %v827_v11  ;;  %v2121_v11 = vld [vmem:[%s3530_s5 + $0xa0] sm:$0xf] }
 0x13c   : > { %v2122_v19 = vor.u32 %v2404_v13, %v2121_v11 }
 0x13d   : > { %v842_v52 = vmul.f32 %v2970_v35, %v2970_v35  ;;  %v844_v58 = vsub.f32 %v2893_v53, %v2970_v35  ;;  %v845_v59 = vsub.f32 %v2895_v55, %v2970_v35 }
 0x13e   : > { %1133 = vmatpush.bf16.msra.mxu3 %v2122_v19 }
 0x142   : > { %v840_v49 = vpop.xlane.xlu0 %839  ;;  %1134 = vmatpush.bf16.msra.mxu3 %v2114_v34 }
 0x143   : > { %v841_v54 = vmul.f32 %v840_v49, %v2940_v21  ;;  %v2106_v49 = vor.u32 %v2400_v41, %v2105_v39 }
 0x145   : > { %v843_v62 = vsub.f32 %v841_v54, %v842_v52  ;;  %v859_v54 = vld [vmem:[%s668_s24] sm:$0x3] }
 0x146   : > { %1135 = vmatpush.bf16.msra.mxu3 %v2106_v49  ;;  %v861_v60 = vperm.slane %v859_v54, 0  ;;  %v862_v61 = vperm.slane %v859_v54, 1 }
 0x147   : > { %v3032_v5 = vadd.f32 1e-05, %v843_v62 }
 0x149   : > { %2525 = vrsqrt.f32 %v3032_v5  ;;  %vm853_vm2 = vweird.f32 %v3032_v5 }
 0x14f   : > { %v2526_v31 = vpop.eup %2525 }
 0x150   : > { %v848_v33 = vmul.f32 %v2526_v31, %v3032_v5  ;;  %vm854_vm1 = vweird.f32 %v2526_v31 }
 0x151   : > { %vm855_vm3 = vmor %vm853_vm2, %vm854_vm1 }
 0x152   : > { %v849_v44 = vmul.f32 %v2526_v31, %v848_v33 }
 0x154   : > { %v850_v48 = vmul.f32 0.5, %v849_v44 }
 0x156   : > { %v851_v52 = vsub.f32 1.5, %v850_v48 }
 0x158   : > { %v852_v56 = vmul.f32 %v2526_v31, %v851_v52 }
 0x15a   : > { %v856_v62 = vsel %vm855_vm3, %v2526_v31, %v852_v56 }
 0x15b   : > { %v857_v63 = vmul.f32 %v856_v62, %v844_v58  ;;  %v858_v1 = vmul.f32 %v856_v62, %v845_v59  ;;  %v2227_v58 = vld [vmem:[%s3492_s9 + $0x70] sm:$0xf]  ;;  %v2430_v59 = vld [vmem:[%s3492_s9 + $0x74] sm:$0xf0] }
 0x15c   : > { %v2446_v62 = vld [vmem:[%s3492_s9 + $0xf4] sm:$0xf0] }
 0x15d   : > { %v865_v3 = vmul.f32 %v861_v60, %v857_v63  ;;  %v866_v4 = vmul.f32 %v862_v61, %v858_v1  ;;  %v2291_v60 = vld [vmem:[%s3492_s9 + $0xf0] sm:$0xf]  ;;  %v2228_v61 = vor.u32 %v2430_v59, %v2227_v58  ;;  %v2429_v63 = vld [vmem:[%s3492_s9 + $0x74] sm:$0xf]  ;;  %v2261_v58 = vld [vmem:[%s3492_s9 + $0xb8] sm:$0xf0] }
 0x15e   : > { %v2292_v1 = vor.u32 %v2446_v62, %v2291_v60  ;;  %v2187_v62 = vld [vmem:[%s3492_s9 + $0x20] sm:$0xf] }
 0x15f   : > { %v873_v5 = vadd.f32 %v869_v0, %v865_v3  ;;  %v874_v6 = vadd.f32 %v870_v2, %v866_v4  ;;  %v2229_v0 = vld [vmem:[%s3492_s9 + $0x78] sm:$0xf0]  ;;  %v2445_v3 = vld [vmem:[%s3492_s9 + $0xf4] sm:$0xf]  ;;  %1450 = vmatpush.bf16.msrb.mxu2 %v2228_v61 }
 0x160   : > { %v2232_v2 = vor.u32 %v2429_v63, %v2229_v0  ;;  %v2293_v4 = vld [vmem:[%s3492_s9 + $0xf8] sm:$0xf0]  ;;  %1463 = vmatpush.bf16.msrb.mxu3 %v2292_v1  ;;  %v2420_v63 = vld [vmem:[%s3492_s9 + $0x24] sm:$0xf0]  ;;  %v2251_v0 = vld [vmem:[%s3492_s9 + $0xa0] sm:$0xf] }
 0x161   : > { %v2037_v7 = vmul.f32 -1.442695, %v873_v5  ;;  %v2038_v8 = vmul.f32 -1.442695, %v874_v6 }
 0x162   : > { %1476 = vmatpush.bf16.msra.mxu0 %v2232_v2  ;;  %v2436_v2 = vld [vmem:[%s3492_s9 + $0xa4] sm:$0xf0] }
 0x163   : > { %2527 = vpow2.f32 %v2037_v7  ;;  %v2428_v7 = vld [vmem:[%s3492_s9 + $0x64] sm:$0xf0] }
 0x164   : > { %2529 = vpow2.f32 %v2038_v8  ;;  %v2283_v8 = vld [vmem:[%s3492_s9 + $0xe0] sm:$0xf] }
 0x169   : > { %v2528_v53 = vpop.eup %2527 }
 0x16a   : > { %v2530_v9 = vpop.eup %2529  ;;  %v881_v55 = vadd.f32 1.0, %v2528_v53  ;;  %v2444_v53 = vld [vmem:[%s3492_s9 + $0xe4] sm:$0xf0] }
 0x16b   : > { %v882_v35 = vadd.f32 1.0, %v2530_v9 }
 0x16c   : > { %2531 = vrcp.f32 %v881_v55  ;;  %v894_v15 = vand.u32 2147483648, %v881_v55  ;;  %v892_v18 = vand.u32 2147483647, %v881_v55  ;;  %vm888_vm6 = vweird.f32 %v881_v55 }
 0x16d   : > { %2533 = vrcp.f32 %v882_v35  ;;  %v909_v19 = vand.u32 2147483648, %v882_v35  ;;  %v907_v22 = vand.u32 2147483647, %v882_v35  ;;  %vm903_vm8 = vweird.f32 %v882_v35 }
 0x16e   : > { %v895_v24 = vor.u32 1.1754944e-38, %v894_v15  ;;  %vm893_vm9 = vcmp.eq.f32.partialorder %v892_v18, 8.507059e+37  ;;  %v2211_v15 = vld [vmem:[%s3492_s9 + $0x50] sm:$0xf] }
 0x16f   : > { %v910_v27 = vor.u32 1.1754944e-38, %v909_v19  ;;  %vm908_vm11 = vcmp.eq.f32.partialorder %v907_v22, 8.507059e+37  ;;  %v2275_v18 = vld [vmem:[%s3492_s9 + $0xd0] sm:$0xf]  ;;  %v2442_v19 = vld [vmem:[%s3492_s9 + $0xd4] sm:$0xf0] }
 0x172   : > { %v2532_v10 = vpop.eup %2531 }
 0x173   : > { %v2534_v11 = vpop.eup %2533  ;;  %v884_v12 = vmul.f32 %v2532_v10, %v881_v55  ;;  %vm889_vm4 = vweird.f32 %v2532_v10  ;;  %v2284_v55 = vor.u32 %v2444_v53, %v2283_v8  ;;  %v2252_v8 = vor.u32 %v2436_v2, %v2251_v0 }
 0x174   : > { %v899_v13 = vmul.f32 %v2534_v11, %v882_v35  ;;  %vm904_vm5 = vweird.f32 %v2534_v11  ;;  %vm890_vm7 = vmor %vm888_vm6, %vm889_vm4  ;;  %v2427_v35 = vld [vmem:[%s3492_s9 + $0x64] sm:$0xf] }
 0x175   : > { %v885_v14 = vsub.f32 1.0, %v884_v12  ;;  %vm905_vm10 = vmor %vm903_vm8, %vm904_vm5  ;;  %1464 = vmatpush.bf16.msrb.mxu3 %v2284_v55  ;;  %v2418_v55 = vld [vmem:[%s3492_s9 + $0x14] sm:$0xf0] }
 0x176   : > { %v900_v16 = vsub.f32 1.0, %v899_v13 }
 0x177   : > { %v886_v17 = vmul.f32 %v2532_v10, %v885_v14  ;;  %v2285_v14 = vld [vmem:[%s3492_s9 + $0xe8] sm:$0xf0] }
 0x178   : > { %v901_v20 = vmul.f32 %v2534_v11, %v900_v16  ;;  %v2426_v16 = vld [vmem:[%s3492_s9 + $0x54] sm:$0xf0] }
 0x179   : > { %v887_v23 = vadd.f32 %v2532_v10, %v886_v17  ;;  %v2212_v22 = vor.u32 %v2426_v16, %v2211_v15  ;;  %v2181_v15 = vld [vmem:[%s3492_s9 + $0x18] sm:$0xf0] }
 0x17a   : > { %v902_v25 = vadd.f32 %v2534_v11, %v901_v20  ;;  %v2425_v20 = vld [vmem:[%s3492_s9 + $0x54] sm:$0xf] }
 0x17b   : > { %v891_v26 = vsel %vm890_vm7, %v2532_v10, %v887_v23  ;;  %v2221_v10 = vld [vmem:[%s3492_s9 + $0x68] sm:$0xf0]  ;;  %v2213_v23 = vld [vmem:[%s3492_s9 + $0x58] sm:$0xf0] }
 0x17c   : > { %v896_v28 = vsel %vm893_vm9, %v895_v24, %v891_v26  ;;  %v906_v29 = vsel %vm905_vm10, %v2534_v11, %v902_v25  ;;  %v2443_v11 = vld [vmem:[%s3492_s9 + $0xe4] sm:$0xf]  ;;  %v2224_v13 = vor.u32 %v2427_v35, %v2221_v10  ;;  %v2441_v24 = vld [vmem:[%s3492_s9 + $0xd4] sm:$0xf]  ;;  %v2277_v25 = vld [vmem:[%s3492_s9 + $0xd8] sm:$0xf0] }
 0x17d   : > { %v913_v30 = vmul.f32 %v896_v28, %v873_v5  ;;  %v911_v31 = vsel %vm908_vm11, %v910_v27, %v906_v29  ;;  %v2219_v5 = vld [vmem:[%s3492_s9 + $0x60] sm:$0xf]  ;;  %v2288_v17 = vor.u32 %v2443_v11, %v2285_v14  ;;  %v2276_v27 = vor.u32 %v2442_v19, %v2275_v18  ;;  %v2243_v35 = vld [vmem:[%s3492_s9 + $0x90] sm:$0xf]  ;;  %v2417_v14 = vld [vmem:[%s3492_s9 + $0x14] sm:$0xf] }
 0x17e   : > { %v914_v32 = vmul.f32 %v911_v31, %v874_v6  ;;  %v2296_v6 = vor.u32 %v2445_v3, %v2293_v4  ;;  %v2220_v9 = vor.u32 %v2428_v7, %v2219_v5  ;;  %1477 = vmatpush.bf16.msra.mxu0 %v2224_v13  ;;  %v2216_v28 = vor.u32 %v2425_v20, %v2213_v23  ;;  %v2203_v29 = vld [vmem:[%s3492_s9 + $0x40] sm:$0xf]  ;;  %v2419_v3 = vld [vmem:[%s3492_s9 + $0x24] sm:$0xf]  ;;  %v2189_v4 = vld [vmem:[%s3492_s9 + $0x28] sm:$0xf0] }
 0x17f   : > { %v915_v33 = vpack.c.bf16 %v913_v30, %v913_v30  ;;  %v2424_v30 = vld [vmem:[%s3492_s9 + $0x44] sm:$0xf0]  ;;  %v2267_v31 = vld [vmem:[%s3492_s9 + $0xc0] sm:$0xf]  ;;  %1465 = vmatpush.bf16.msrb.mxu3 %v2276_v27  ;;  %v2435_v5 = vld [vmem:[%s3492_s9 + $0xa4] sm:$0xf]  ;;  %v2188_v7 = vor.u32 %v2420_v63, %v2187_v62  ;;  %v2192_v53 = vor.u32 %v2419_v3, %v2189_v4  ;;  %v2184_v23 = vor.u32 %v2417_v14, %v2181_v15 }
 0x180   : > { %v916_v34 = vpack.c.bf16 %v914_v32, %v914_v32  ;;  %1489 = vmatpush.bf16.msra.mxu1 %v2296_v6  ;;  %1451 = vmatpush.bf16.msrb.mxu2 %v2220_v9  ;;  %v2253_v6 = vld [vmem:[%s3492_s9 + $0xa8] sm:$0xf0]  ;;  %v2179_v9 = vld [vmem:[%s3492_s9 + $0x10] sm:$0xf]  ;;  %v2434_v13 = vld [vmem:[%s3492_s9 + $0x94] sm:$0xf0] }
 0x181   : > { %1123 = vmatmul.bf16.vlgmr.msra.gmra.mxu2 %v915_v33  ;;  %1149 = vmatmul.bf16.vlgmr.msrb.gmra.mxu0 %v915_v33  ;;  %v2256_v11 = vor.u32 %v2435_v5, %v2253_v6  ;;  %v2245_v18 = vld [vmem:[%s3492_s9 + $0x98] sm:$0xf0]  ;;  %v2180_v19 = vor.u32 %v2418_v55, %v2179_v9 }
 0x182   : > { %1136 = vmatmul.bf16.vlgmr.msra.gmra.mxu3 %v916_v34  ;;  %1162 = vmatmul.bf16.vlgmr.msrb.gmra.mxu1 %v916_v34  ;;  %v2280_v34 = vor.u32 %v2441_v24, %v2277_v25  ;;  %v2171_v24 = vld [vmem:[%s3492_s9] sm:$0xf]  ;;  %v2416_v25 = vld [vmem:[%s3492_s9 + $0x4] sm:$0xf0] }
 0x183   : > { %1478 = vmatpush.bf16.msra.mxu0 %v2216_v28  ;;  %v2432_v28 = vld [vmem:[%s3492_s9 + $0x84] sm:$0xf0] }
 0x184   : > { %1490 = vmatpush.bf16.msra.mxu1 %v2288_v17  ;;  %1452 = vmatpush.bf16.msrb.mxu2 %v2212_v22  ;;  %v2433_v17 = vld [vmem:[%s3492_s9 + $0x94] sm:$0xf]  ;;  %v2244_v22 = vor.u32 %v2434_v13, %v2243_v35 }
 0x185   : > { %v2248_v27 = vor.u32 %v2433_v17, %v2245_v18 }
 0x188   : > { %1491 = vmatpush.bf16.msra.mxu1 %v2280_v34  ;;  %v2172_v34 = vor.u32 %v2416_v25, %v2171_v24 }
 0x1fe   : > { %v1150_v37 = vpop.f32.mrf.mxu0 }
 0x1ff   : > { %v1163_v39 = vpop.f32.mrf.mxu1  ;;  %v1151_v41 = vadd.f32 %v1150_v37, %v952_v38  ;;  %v2423_v37 = vld [vmem:[%s3492_s9 + $0x44] sm:$0xf]  ;;  %v2205_v38 = vld [vmem:[%s3492_s9 + $0x48] sm:$0xf0] }
 0x201   : > { %v3127_v46 = vadd.f32 %v1163_v39, %v1151_v41  ;;  %v2439_v39 = vld [vmem:[%s3492_s9 + $0xc4] sm:$0xf] }
 0x203   : > { %v1172_v54 = vmul.f32 %v3127_v46, %v3127_v46 }
 0x204   : > { %v1124_v42 = vpop.f32.mrf.mxu2 }
 0x205   : > { %v1125_v43 = vadd.f32 %v1124_v42, %v951_v40  ;;  %v1137_v44 = vpop.f32.mrf.mxu3  ;;  %v2269_v40 = vld [vmem:[%s3492_s9 + $0xc8] sm:$0xf0]  ;;  %v2204_v42 = vor.u32 %v2424_v30, %v2203_v29  ;;  %v2415_v29 = vld [vmem:[%s3492_s9 + $0x4] sm:$0xf] }
 0x206   : > { %v1152_v45 = vpop.f32.mrf.mxu0  ;;  %v2173_v30 = vld [vmem:[%s3492_s9 + $0x8] sm:$0xf0] }
 0x207   : > { %v3129_v47 = vadd.f32 %v1137_v44, %v1125_v43  ;;  %v1165_v48 = vpop.f32.mrf.mxu1  ;;  %v2195_v43 = vld [vmem:[%s3492_s9 + $0x30] sm:$0xf]  ;;  %v2268_v44 = vor.u32 %v2440_v36, %v2267_v31  ;;  %v2208_v45 = vor.u32 %v2423_v37, %v2205_v38  ;;  %1453 = vmatpush.bf16.msrb.mxu2 %v2204_v42  ;;  %v2176_v38 = vor.u32 %v2415_v29, %v2173_v30  ;;  %v1202_v42 = vld [vmem:[%s680_s20] sm:$0x3]  ;;  %s3535_s20 = smov %s3534_s26  ;;  %s1797_s26 = scalar_lea.hbm %s3537_s2, %s2364_s18 }
 0x208   : > { %v2422_v48 = vld [vmem:[%s3492_s9 + $0x34] sm:$0xf0]  ;;  %s3538_s27 = scalar_lea.vmem %s3535_s20, %s2872_s30  ;;  %s1801_s6 = sshll.u32 %s1797_s26, 4  ;;  %s1802_s6 = int_to_ptr.hbm [resolvable:$true] %s1801_s6 }
 0x209   : > { %v1167_v49 = vadd.f32 %v3127_v46, %v3129_v47  ;;  %v1171_v52 = vmul.f32 %v3129_v47, %v3129_v47  ;;  %v2196_v59 = vor.u32 %v2422_v48, %v2195_v43  ;;  %1466 = vmatpush.bf16.msrb.mxu3 %v2268_v44  ;;  %1479 = vmatpush.bf16.msra.mxu0 %v2208_v45  ;;  %s2573_s24 = sshra.s32 %s1802_s6, 4  ;;  %s2579_s30 = scalar_lea.hbm %s3537_s2, 16  ;;  %s2574_s24 = int_to_ptr.hbm [resolvable:$true] %s2573_s24 }
 0x20a   : > { %s2575_s18 = scalar_lea.hbm %s2574_s24, 8  ;;  %p2580_p1 = scmp.lt.s32.totalorder %s2574_s24, %s3537_s2 }
 0x20b   : > { %1168 = vadd.xlane.f32.xlu1 %v1167_v49  ;;  %v1173_v56 = vadd.f32 %v1172_v54, %v1171_v52  ;;  %v2259_v49 = vld [vmem:[%s3492_s9 + $0xb0] sm:$0xf]  ;;  %v2272_v52 = vor.u32 %v2439_v39, %v2269_v40  ;;  %v2421_v54 = vld [vmem:[%s3492_s9 + $0x34] sm:$0xf]  ;;  %1454 = vmatpush.bf16.msrb.mxu2 %v2196_v59  ;;  %v1194_v39 = vld [vmem:[%s676_s25] sm:$0x3]  ;;  %p2576_p12 = scmp.ne.s32.totalorder %s2574_s24, %s2575_s18  ;;  %p2581_p2 = scmp.lt.s32.totalorder %s2579_s30, %s2575_s18 }
 0x20c   : > { %v1126_v50 = vpop.f32.mrf.mxu2  ;;  %v1196_v45 = vperm.slane %v1194_v39, 0  ;;  %v1197_v48 = vperm.slane %v1194_v39, 1 }
 0x20d   : > { %v1139_v51 = vpop.f32.mrf.mxu3  ;;  %v2438_v50 = vld [vmem:[%s3492_s9 + $0xb4] sm:$0xf0]  ;;  %1492 = vmatpush.bf16.msra.mxu1 %v2272_v52  ;;  %v1204_v52 = vperm.slane %v1202_v42, 0  ;;  %p2577_p13 = pnand %p2576_p12, %p2771_p4  ;;  %p2582_p3 = por %p2581_p2, %p2580_p1 }
 0x20e   : > { %v2260_v60 = vor.u32 %v2438_v50, %v2259_v49 }
 0x20f   : > { %1455 = vmatpush.bf16.msrb.mxu2 %v2188_v7  ;;  %p2578_p0 = pneg %p2577_p13 }
 0x210   : > { %1467 = vmatpush.bf16.msrb.mxu3 %v2260_v60 }
 0x211   : > { %p2583_p5 = pnand %p2582_p3, %p2578_p0 }
 0x213   : > { %1174 = vadd.xlane.f32.xlu1 %v1173_v56  ;;  %v2197_v56 = vld [vmem:[%s3492_s9 + $0x38] sm:$0xf0]  ;;  %1456 = vmatpush.bf16.msrb.mxu2 %v2180_v19 }
 0x214   : > { %v2200_v61 = vor.u32 %v2421_v54, %v2197_v56  ;;  %1468 = vmatpush.bf16.msrb.mxu3 %v2252_v8  ;;  %v1205_v56 = vperm.slane %v1202_v42, 1 }
 0x216   : > { %1480 = vmatpush.bf16.msra.mxu0 %v2200_v61 }
 0x217   : > { %1457 = vmatpush.bf16.msrb.mxu2 %v2172_v34 }
 0x218   : > { %1469 = vmatpush.bf16.msrb.mxu3 %v2244_v22  ;;  %v1284_v22 = vld [vmem:[%s3493_s10] sm:$0x3] }
 0x219   : > { %v1287_v24 = vperm.slane %v1284_v22, 1 }
 0x21a   : > { %1481 = vmatpush.bf16.msra.mxu0 %v2192_v53 }
 0x21e   : > { %1482 = vmatpush.bf16.msra.mxu0 %v2184_v23 }
 0x222   : > { %1483 = vmatpush.bf16.msra.mxu0 %v2176_v38 }
 0x27e   : > { %v1169_v57 = vpop.xlane.xlu1 %1168 }
 0x27f   : > { %v3183_v12 = vmul.f32 %v1169_v57, %v2940_v21  ;;  %v2437_v57 = vld [vmem:[%s3492_s9 + $0xb4] sm:$0xf] }
 0x280   : > { %v2264_v1 = vor.u32 %v2437_v57, %v2261_v58 }
 0x281   : > { %v1177_v32 = vmul.f32 %v3183_v12, %v3183_v12  ;;  %v1179_v43 = vsub.f32 %v3129_v47, %v3183_v12  ;;  %v1180_v44 = vsub.f32 %v3127_v46, %v3183_v12 }
 0x282   : > { %1493 = vmatpush.bf16.msra.mxu1 %v2264_v1 }
 0x286   : > { %v1175_v26 = vpop.xlane.xlu1 %1174  ;;  %1494 = vmatpush.bf16.msra.mxu1 %v2256_v11 }
 0x287   : > { %v1176_v33 = vmul.f32 %v1175_v26, %v2940_v21  ;;  %v2235_v26 = vld [vmem:[%s3492_s9 + $0x80] sm:$0xf] }
 0x288   : > { %v2236_v37 = vor.u32 %v2432_v28, %v2235_v26  ;;  %v1286_v26 = vperm.slane %v1284_v22, 0 }
 0x289   : > { %v1178_v41 = vsub.f32 %v1176_v33, %v1177_v32  ;;  %v2431_v32 = vld [vmem:[%s3492_s9 + $0x84] sm:$0xf]  ;;  %v2237_v33 = vld [vmem:[%s3492_s9 + $0x88] sm:$0xf0] }
 0x28a   : > { %1495 = vmatpush.bf16.msra.mxu1 %v2248_v27  ;;  %v2240_v40 = vor.u32 %v2431_v32, %v2237_v33  ;;  %1470 = vmatpush.bf16.msrb.mxu3 %v2236_v37 }
 0x28b   : > { %v3251_v51 = vadd.f32 1e-05, %v1178_v41 }
 0x28d   : > { %2535 = vrsqrt.f32 %v3251_v51  ;;  %vm1188_vm13 = vweird.f32 %v3251_v51 }
 0x28e   : > { %1496 = vmatpush.bf16.msra.mxu1 %v2240_v40 }
 0x293   : > { %v2536_v10 = vpop.eup %2535 }
 0x294   : > { %v1183_v16 = vmul.f32 %v2536_v10, %v3251_v51  ;;  %vm1189_vm12 = vweird.f32 %v2536_v10 }
 0x295   : > { %vm1190_vm14 = vmor %vm1188_vm13, %vm1189_vm12 }
 0x296   : > { %v1184_v20 = vmul.f32 %v2536_v10, %v1183_v16 }
 0x298   : > { %v1185_v31 = vmul.f32 0.5, %v1184_v20 }
 0x29a   : > { %v1186_v36 = vsub.f32 1.5, %v1185_v31 }
 0x29c   : > { %v1187_v41 = vmul.f32 %v2536_v10, %v1186_v36 }
 0x29e   : > { %v1191_v49 = vsel %vm1190_vm14, %v2536_v10, %v1187_v41 }
 0x29f   : > { %v1192_v50 = vmul.f32 %v1191_v49, %v1179_v43  ;;  %v1193_v54 = vmul.f32 %v1191_v49, %v1180_v44  ;;  %v2454_v43 = vld [vmem:[%s3496_s13 + $0x38] sm:$0xff] }
 0x2a0   : > { %v2462_v44 = vld [vmem:[%s3496_s13 + $0x78] sm:$0xff]  ;;  %1719 = vmatpush.bf16.msra.mxu2 %v2454_v43 }
 0x2a1   : > { %v1200_v51 = vmul.f32 %v1196_v45, %v1192_v50  ;;  %v1201_v57 = vmul.f32 %v1197_v48, %v1193_v54  ;;  %1732 = vmatpush.bf16.msra.mxu3 %v2462_v44  ;;  %v2453_v45 = vld [vmem:[%s3496_s13 + $0x30] sm:$0xff]  ;;  %v2452_v50 = vld [vmem:[%s3496_s13 + $0x28] sm:$0xff] }
 0x2a2   : > { %v2461_v48 = vld [vmem:[%s3496_s13 + $0x70] sm:$0xff] }
 0x2a3   : > { %v1208_v58 = vadd.f32 %v1204_v52, %v1200_v51  ;;  %v1209_v59 = vadd.f32 %v1205_v56, %v1201_v57  ;;  %v2460_v52 = vld [vmem:[%s3496_s13 + $0x68] sm:$0xff] }
 0x2a4   : > { %1720 = vmatpush.bf16.msra.mxu2 %v2453_v45 }
 0x2a5   : > { %v2167_v47 = vmul.f32 -1.442695, %v1208_v58  ;;  %v2168_v60 = vmul.f32 -1.442695, %v1209_v59  ;;  %1733 = vmatpush.bf16.msra.mxu3 %v2461_v48 }
 0x2a7   : > { %2537 = vpow2.f32 %v2167_v47 }
 0x2a8   : > { %2539 = vpow2.f32 %v2168_v60  ;;  %1721 = vmatpush.bf16.msra.mxu2 %v2452_v50  ;;  %v2458_v60 = vld [vmem:[%s3496_s13 + $0x58] sm:$0xff] }
 0x2a9   : > { %1734 = vmatpush.bf16.msra.mxu3 %v2460_v52 }
 0x2ad   : > { %v2538_v46 = vpop.eup %2537 }
 0x2ae   : > { %v2540_v12 = vpop.eup %2539  ;;  %v1216_v61 = vadd.f32 1.0, %v2538_v46  ;;  %v2449_v46 = vld [vmem:[%s3496_s13 + $0x10] sm:$0xff] }
 0x2af   : > { %v1217_v62 = vadd.f32 1.0, %v2540_v12  ;;  %v2457_v12 = vld [vmem:[%s3496_s13 + $0x50] sm:$0xff] }
 0x2b0   : > { %2541 = vrcp.f32 %v1216_v61  ;;  %v1229_v4 = vand.u32 2147483648, %v1216_v61  ;;  %v1227_v7 = vand.u32 2147483647, %v1216_v61  ;;  %vm1223_vm1 = vweird.f32 %v1216_v61 }
 0x2b1   : > { %2543 = vrcp.f32 %v1217_v62  ;;  %v1244_v8 = vand.u32 2147483648, %v1217_v62  ;;  %v1242_v9 = vand.u32 2147483647, %v1217_v62  ;;  %vm1238_vm3 = vweird.f32 %v1217_v62 }
 0x2b2   : > { %v1230_v35 = vor.u32 1.1754944e-38, %v1229_v4  ;;  %vm1228_vm4 = vcmp.eq.f32.partialorder %v1227_v7, 8.507059e+37  ;;  %v2455_v4 = vld [vmem:[%s3496_s13 + $0x40] sm:$0xff] }
 0x2b3   : > { %v1245_v13 = vor.u32 1.1754944e-38, %v1244_v8  ;;  %vm1243_vm6 = vcmp.eq.f32.partialorder %v1242_v9, 8.507059e+37  ;;  %v1537_v8 = vld [vmem:[%s688_s16] sm:$0x3]  ;;  %s1965_s16 = sshll.u32 %s656_s23, 3 }
 0x2b4   : > { %s658_s4 = scalar_lea.vmem [#allocation2], %s1965_s16 }
 0x2b5   : > { %s1799_s5 = sshll.u32 %s658_s4, 4  ;;  %s1800_s5 = int_to_ptr.vmem [resolvable:$true] %s1799_s5 }
 0x2b6   : > { %v2542_v63 = vpop.eup %2541 }
 0x2b7   : > { %v2544_v0 = vpop.eup %2543  ;;  %v1219_v1 = vmul.f32 %v2542_v63, %v1216_v61  ;;  %vm1224_vm15 = vweird.f32 %v2542_v63 }
 0x2b8   : > { %v1234_v2 = vmul.f32 %v2544_v0, %v1217_v62  ;;  %vm1239_vm0 = vweird.f32 %v2544_v0  ;;  %vm1225_vm2 = vmor %vm1223_vm1, %vm1224_vm15 }
 0x2b9   : > { %v1220_v3 = vsub.f32 1.0, %v1219_v1  ;;  %vm1240_vm5 = vmor %vm1238_vm3, %vm1239_vm0 }
 0x2ba   : > { %v1235_v5 = vsub.f32 1.0, %v1234_v2 }
 0x2bb   : > { %v1221_v6 = vmul.f32 %v2542_v63, %v1220_v3  ;;  %v2447_v3 = vld [vmem:[%s3496_s13] sm:$0xff] }
 0x2bc   : > { %v1236_v53 = vmul.f32 %v2544_v0, %v1235_v5 }
 0x2bd   : > { %v1222_v55 = vadd.f32 %v2542_v63, %v1221_v6  ;;  %v1529_v6 = vld [vmem:[%s684_s0] sm:$0x3] }
 0x2be   : > { %v1237_v10 = vadd.f32 %v2544_v0, %v1236_v53 }
 0x2bf   : > { %v1226_v11 = vsel %vm1225_vm2, %v2542_v63, %v1222_v55  ;;  %v2448_v63 = vld [vmem:[%s3496_s13 + $0x8] sm:$0xff]  ;;  %v1531_v55 = vperm.slane %v1529_v6, 0 }
 0x2c0   : > { %v1231_v14 = vsel %vm1228_vm4, %v1230_v35, %v1226_v11  ;;  %v1241_v15 = vsel %vm1240_vm5, %v2544_v0, %v1237_v10  ;;  %v2456_v0 = vld [vmem:[%s3496_s13 + $0x48] sm:$0xff]  ;;  %v1532_v35 = vperm.slane %v1529_v6, 1 }
 0x2c1   : > { %v1248_v16 = vmul.f32 %v1231_v14, %v1208_v58  ;;  %v1246_v17 = vsel %vm1243_vm6, %v1245_v13, %v1241_v15  ;;  %v2451_v58 = vld [vmem:[%s3496_s13 + $0x20] sm:$0xff]  ;;  %v1539_v14 = vperm.slane %v1537_v8, 0  ;;  %v1540_v15 = vperm.slane %v1537_v8, 1 }
 0x2c2   : > { %v1249_v18 = vmul.f32 %v1246_v17, %v1209_v59  ;;  %v2459_v59 = vld [vmem:[%s3496_s13 + $0x60] sm:$0xff]  ;;  %1722 = vmatpush.bf16.msra.mxu2 %v2451_v58 }
 0x2c3   : > { %v1250_v19 = vpack.c.bf16 %v1248_v16, %v1248_v16  ;;  %1735 = vmatpush.bf16.msra.mxu3 %v2459_v59 }
 0x2c4   : > { %v1251_v20 = vpack.c.bf16 %v1249_v18, %v1249_v18 }
 0x2c5   : > { %1458 = vmatmul.bf16.vlgmr.msrb.gmra.mxu2 %v1250_v19  ;;  %1484 = vmatmul.bf16.vlgmr.msra.gmra.mxu0 %v1250_v19 }
 0x2c6   : > { %1471 = vmatmul.bf16.vlgmr.msrb.gmra.mxu3 %v1251_v20  ;;  %1497 = vmatmul.bf16.vlgmr.msra.gmra.mxu1 %v1251_v20 }
 0x2c7   : > { %1736 = vmatpush.bf16.msra.mxu3 %v2458_v60 }
 0x2cb   : > { %1737 = vmatpush.bf16.msra.mxu3 %v2457_v12  ;;  %v2640_v12 = vmov 128.0  }
 0x2cf   : > { %1738 = vmatpush.bf16.msra.mxu3 %v2456_v0 }
 0x2d3   : > { %1739 = vmatpush.bf16.msra.mxu3 %v2455_v4 }
 0x342   : > { %v1485_v23 = vpop.f32.mrf.mxu0 }
 0x343   : > { %v1498_v25 = vpop.f32.mrf.mxu1  ;;  %v1486_v27 = vadd.f32 %v1485_v23, %v1287_v24 }
 0x345   : > { %v3355_v32 = vadd.f32 %v1498_v25, %v1486_v27 }
 0x347   : > { %v1507_v40 = vmul.f32 %v3355_v32, %v3355_v32 }
 0x348   : > { %v1459_v28 = vpop.f32.mrf.mxu2 }
 0x349   : > { %v1460_v29 = vadd.f32 %v1459_v28, %v1286_v26  ;;  %v1472_v30 = vpop.f32.mrf.mxu3 }
 0x34a   : > { %v1487_v31 = vpop.f32.mrf.mxu0 }
 0x34b   : > { %v3357_v33 = vadd.f32 %v1472_v30, %v1460_v29  ;;  %v1500_v34 = vpop.f32.mrf.mxu1 }
 0x34d   : > { %v1502_v36 = vadd.f32 %v3355_v32, %v3357_v33  ;;  %v1506_v39 = vmul.f32 %v3357_v33, %v3357_v33 }
 0x34f   : > { %1503 = vadd.xlane.f32.xlu2 %v1502_v36  ;;  %v1508_v41 = vadd.f32 %v1507_v40, %v1506_v39 }
 0x350   : > { %v1461_v37 = vpop.f32.mrf.mxu2 }
 0x351   : > { %v1474_v38 = vpop.f32.mrf.mxu3 }
 0x357   : > { %1509 = vadd.xlane.f32.xlu2 %v1508_v41 }
 0x3c2   : > { %v1504_v42 = vpop.xlane.xlu2 %1503 }
 0x3c3   : > { %v1505_v49 = vmul.f32 %v1504_v42, %v2940_v21 }
 0x3c5   : > { %v1512_v56 = vmul.f32 %v1505_v49, %v1505_v49  ;;  %v1514_v53 = vsub.f32 %v3357_v33, %v1505_v49  ;;  %v1515_v9 = vsub.f32 %v3355_v32, %v1505_v49 }
 0x3ca   : > { %v1510_v54 = vpop.xlane.xlu2 %1509 }
 0x3cb   : > { %v1511_v51 = vmul.f32 %v1510_v54, %v2940_v21  ;;  %v2450_v21 = vld [vmem:[%s3496_s13 + $0x18] sm:$0xff] }
 0x3cc   : > { %1723 = vmatpush.bf16.msra.mxu2 %v2450_v21 }
 0x3cd   : > { %v1513_v57 = vsub.f32 %v1511_v51, %v1512_v56  ;;  %v2520_v51 = vld [vmem:[%s3497_s14] ss:$0 sm:$0xff] }
 0x3cf   : > { %v1516_v47 = vadd.f32 1e-05, %v1513_v57 }
 0x3d0   : > { %1724 = vmatpush.bf16.msra.mxu2 %v2449_v46 }
 0x3d1   : > { %2545 = vrsqrt.f32 %v1516_v47  ;;  %vm1523_vm8 = vweird.f32 %v1516_v47 }
 0x3d4   : > { %1725 = vmatpush.bf16.msra.mxu2 %v2448_v63 }
 0x3d7   : > { %v2546_v61 = vpop.eup %2545 }
 0x3d8   : > { %v1518_v62 = vmul.f32 %v2546_v61, %v1516_v47  ;;  %vm1524_vm7 = vweird.f32 %v2546_v61  ;;  %1726 = vmatpush.bf16.msra.mxu2 %v2447_v3 }
 0x3d9   : > { %vm1525_vm9 = vmor %vm1523_vm8, %vm1524_vm7 }
 0x3da   : > { %v1519_v1 = vmul.f32 %v2546_v61, %v1518_v62 }
 0x3dc   : > { %v1520_v2 = vmul.f32 0.5, %v1519_v1 }
 0x3de   : > { %v1521_v5 = vsub.f32 1.5, %v1520_v2 }
 0x3e0   : > { %v1522_v7 = vmul.f32 %v2546_v61, %v1521_v5 }
 0x3e2   : > { %v1526_v10 = vsel %vm1525_vm9, %v2546_v61, %v1522_v7 }
 0x3e3   : > { %v1527_v11 = vmul.f32 %v1526_v10, %v1514_v53  ;;  %v1528_v13 = vmul.f32 %v1526_v10, %v1515_v9 }
 0x3e5   : > { %v1535_v16 = vmul.f32 %v1531_v55, %v1527_v11  ;;  %v1536_v17 = vmul.f32 %v1532_v35, %v1528_v13 }
 0x3e7   : > { %v1543_v18 = vadd.f32 %v1539_v14, %v1535_v16  ;;  %v1544_v19 = vadd.f32 %v1540_v15, %v1536_v17  ;;  %v2521_v15 = vld [vmem:[%s691_s22] ss:$0 sm:$0xff]  ;;  %s1786_s22 = scalar_lea.sflag [#allocation3], %s656_s23 }
 0x3e9   : > { %v2297_v20 = vmul.f32 -1.442695, %v1543_v18  ;;  %v2298_v22 = vmul.f32 -1.442695, %v1544_v19 }
 0x3eb   : > { %2547 = vpow2.f32 %v2297_v20 }
 0x3ec   : > { %2549 = vpow2.f32 %v2298_v22 }
 0x3f1   : > { %v2548_v23 = vpop.eup %2547 }
 0x3f2   : > { %v2550_v24 = vpop.eup %2549  ;;  %v1551_v25 = vadd.f32 1.0, %v2548_v23 }
 0x3f3   : > { %v1552_v26 = vadd.f32 1.0, %v2550_v24 }
 0x3f4   : > { %2551 = vrcp.f32 %v1551_v25  ;;  %v1564_v32 = vand.u32 2147483648, %v1551_v25  ;;  %v1562_v36 = vand.u32 2147483647, %v1551_v25  ;;  %vm1558_vm12 = vweird.f32 %v1551_v25 }
 0x3f5   : > { %2553 = vrcp.f32 %v1552_v26  ;;  %v1579_v37 = vand.u32 2147483648, %v1552_v26  ;;  %v1577_v39 = vand.u32 2147483647, %v1552_v26  ;;  %vm1573_vm14 = vweird.f32 %v1552_v26 }
 0x3f6   : > { %v1565_v41 = vor.u32 1.1754944e-38, %v1564_v32  ;;  %vm1563_vm15 = vcmp.eq.f32.partialorder %v1562_v36, 8.507059e+37  ;;  %2555 = vrcp.f32 %v2640_v12 }
 0x3f7   : > { %v1580_v44 = vor.u32 1.1754944e-38, %v1579_v37  ;;  %vm1578_vm1 = vcmp.eq.f32.partialorder %v1577_v39, 8.507059e+37 }
 0x3fa   : > { %v2552_v27 = vpop.eup %2551 }
 0x3fb   : > { %v2554_v28 = vpop.eup %2553  ;;  %v1554_v29 = vmul.f32 %v2552_v27, %v1551_v25  ;;  %vm1559_vm10 = vweird.f32 %v2552_v27 }
 0x3fc   : > { %v1569_v30 = vmul.f32 %v2554_v28, %v1552_v26  ;;  %vm1574_vm11 = vweird.f32 %v2554_v28  ;;  %vm1560_vm13 = vmor %vm1558_vm12, %vm1559_vm10  ;;  %v2556_v61 = vpop.eup %2555 }
 0x3fd   : > { %v1555_v31 = vsub.f32 1.0, %v1554_v29  ;;  %vm1575_vm0 = vmor %vm1573_vm14, %vm1574_vm11  ;;  %v1748_v62 = vmul.f32 128.0, %v2556_v61  ;;  %vm1752_vm2 = vweird.f32 %v2556_v61 }
 0x3fe   : > { %v1570_v33 = vsub.f32 1.0, %v1569_v30 }
 0x3ff   : > { %v1556_v34 = vmul.f32 %v2552_v27, %v1555_v31  ;;  %v1749_v63 = vsub.f32 1.0, %v1748_v62 }
 0x400   : > { %v1571_v38 = vmul.f32 %v2554_v28, %v1570_v33 }
 0x401   : > { %v1557_v40 = vadd.f32 %v2552_v27, %v1556_v34  ;;  %v1750_v0 = vmul.f32 %v2556_v61, %v1749_v63 }
 0x402   : > { %v1572_v42 = vadd.f32 %v2554_v28, %v1571_v38 }
 0x403   : > { %v1561_v43 = vsel %vm1560_vm13, %v2552_v27, %v1557_v40  ;;  %v1751_v1 = vadd.f32 %v2556_v61, %v1750_v0 }
 0x404   : > { %v1566_v45 = vsel %vm1563_vm15, %v1565_v41, %v1561_v43  ;;  %v1576_v48 = vsel %vm1575_vm0, %v2554_v28, %v1572_v42 }
 0x405   : > { %v1583_v49 = vmul.f32 %v1566_v45, %v1543_v18  ;;  %v1581_v50 = vsel %vm1578_vm1, %v1580_v44, %v1576_v48  ;;  %v1753_v2 = vsel %vm1752_vm2, %v2556_v61, %v1751_v1  ;;  %v2522_v18 = vld [vmem:[%s3538_s27] ss:$0 sm:$0xff] }
 0x406   : > { %v1584_v52 = vmul.f32 %v1581_v50, %v1544_v19 }
 0x407   : > { %v1585_v54 = vpack.c.bf16 %v1583_v49, %v1583_v49 }
 0x408   : > { %v1586_v56 = vpack.c.bf16 %v1584_v52, %v1584_v52 }
 0x409   : > { %1727 = vmatmul.bf16.vlgmr.msra.gmra.mxu2 %v1585_v54 }
 0x40a   : > { %1740 = vmatmul.bf16.vlgmr.msra.gmra.mxu3 %v1586_v56 }
 0x48c   : > { %v1728_v57 = vpop.f32.mrf.mxu2 }
 0x48d   : > { %v1729_v58 = vadd.f32 %v2520_v51, %v1728_v57  ;;  %v1741_v59 = vpop.f32.mrf.mxu3 }
 0x48f   : > { %v1742_v47 = vadd.f32 %v1741_v59, %v1729_v58 }
 0x491   : > { %1745 = vadd.xlane.f32.xlu0 %v1742_v47  ;;  %v1755_v21 = vmul.f32 %v1742_v47, %v1742_v47 }
 0x493   : > { %1756 = vadd.xlane.f32.xlu1 %v1755_v21 }
 0x494   : > { %v1730_v60 = vpop.f32.mrf.mxu2 }
 0x495   : > { %v1743_v46 = vpop.f32.mrf.mxu3 }
 0x504   : > { %v1746_v3 = vpop.xlane.xlu0 %1745 }
 0x505   : > { %v1754_v4 = vmul.f32 %v1753_v2, %v1746_v3 }
 0x506   : > { %v1757_v5 = vpop.xlane.xlu1 %1756 }
 0x507   : > { %v1759_v6 = vmul.f32 %v1754_v4, %v1754_v4  ;;  %v1758_v7 = vmul.f32 %v1757_v5, %v1753_v2  ;;  %v1761_v14 = vsub.f32 %v1742_v47, %v1754_v4 }
 0x509   : > { %v1760_v8 = vsub.f32 %v1758_v7, %v1759_v6 }
 0x50b   : > { %v1762_v53 = vadd.f32 1e-05, %v1760_v8 }
 0x50d   : > { %2557 = vrsqrt.f32 %v1762_v53  ;;  %vm1769_vm4 = vweird.f32 %v1762_v53 }
 0x513   : > { %v2558_v9 = vpop.eup %2557 }
 0x514   : > { %v1764_v55 = vmul.f32 %v2558_v9, %v1762_v53  ;;  %vm1770_vm3 = vweird.f32 %v2558_v9 }
 0x515   : > { %vm1771_vm5 = vmor %vm1769_vm4, %vm1770_vm3 }
 0x516   : > { %v1765_v35 = vmul.f32 %v2558_v9, %v1764_v55 }
 0x518   : > { %v1766_v10 = vmul.f32 0.5, %v1765_v35 }
 0x51a   : > { %v1767_v11 = vsub.f32 1.5, %v1766_v10 }
 0x51c   : > { %v1768_v13 = vmul.f32 %v2558_v9, %v1767_v11 }
 0x51e   : > { %v1772_v16 = vsel %vm1771_vm5, %v2558_v9, %v1768_v13 }
 0x51f   : > { %v1773_v17 = vmul.f32 %v1772_v16, %v1761_v14 }
 0x521   : > { %v1778_v19 = vmul.f32 %v2521_v15, %v1773_v17 }
 0x523   : > { %v1783_v20 = vadd.f32 %v2522_v18, %v1778_v19 }
 0x525   : > { %1784 = vst [vmem:[%s658_s4] sm:$0xff] %v1783_v20 }
 0x526   : > { %2586 = shalt.err (!%p2583_p5)
}
 0x527   : > { %2463 = dma.vmem_to_hbm [thread:$0]  (%p2771_p4), %s1800_s5, 128, %s1802_s6, %s1786_s22  }
 0x528 PF: > { %s3539_s4 = sld [smem:[#allocation5_spill]]  ;;  %p2469_p6 = scmp.ge.s32.totalorder %s2637_s29, 2 }
 0x52a   : > { %p2466_p7 = pnand %p2469_p6, %p2778_p8 }
 0x52c   : > { %p2467_p9 = pneg %p2466_p7 }
 0x52e   : > { %s1813_s23 = sand.u32 1, %s3539_s4  }
 0x52f   : > { %s1814_s0 = scalar_lea.sflag [#allocation3], %s1813_s23 }
 0x530   : > { %2612 = dma.done.wait (%p2467_p9), %s1814_s0, 128  }
 0x531   : > { %2614 = vsyncadd (%p2467_p9), %s1814_s0, 4294967168  ;;  %s30_s29 = sadd.s32 1, %s2637_s29   ;;  %s3540_s24 = sld [smem:[#allocation6_spill]] }
 0x532   : > { %p27_p10 = scmp.ge.s32.totalorder %s30_s29, 4   ;;  %s3541_s25 = sld [smem:[#allocation7_spill]] }
 0x533   : > { %s3542_s26 = sld [smem:[#allocation10_spill]] }
 0x534   : > { %s3543_s27 = sld [smem:[#allocation8_spill]]  ;;  %29 = sbr.rel (!%p27_p10) target bundleno = 14 (0xe), region = 147 }
 0x535   : > { %s3544_s28 = sld [smem:[#allocation9_spill]] }
 0x539   :  { %1820 = vsyncpa [#allocation3], 1 }
 0x53a   :  { %1822 = vsyncpa [#allocation3 + $0x1], 1 }

</bundles_post_ra>
